<compile_context>
chip_gen: v6e
topology: v6e:2x2x1
jax: 0.10.0
libtpu: 0.0.40
codegen_flags: <defaults>
</compile_context>

<pallas_src>
from functools import partial

import numpy as np
import jax
import jax.numpy as jnp
from jax import lax
from jax.experimental import pallas as pl
from jax.experimental.pallas import tpu as pltpu


SUB_P = 256          # pillars per output sub-block (lane-dense output width)
POINT_CHUNK = 2      # points packed side-by-side on the lane axis per MXU dot
TILE_P_MAX = 8192    # pillars per grid step upper bound (~13 MiB double-buffered VMEM)


# ----------------------------- Pallas kernel (PFNLayer hot path) -----------------------------
def pfn_kernel(f_ref, wt_ref, b_ref, o_ref):
    # f_ref:  (NS, NPC, CIN, CHUNK*SUB)  point-pair features, pillars lane-minor
    # wt_ref: (COUT, CIN)                (W * bn_scale)^T  -- BN scale folded into the weight
    # b_ref:  (COUT, 1)                  folded BatchNorm1d (eval mode) bias
    # o_ref:  (NS, COUT, SUB)            relu(max_over_points(x @ Ws) + bias), lane-dense
    ns, npc, _, csub = f_ref.shape
    _, cout, sub = o_ref.shape
    chunk = csub // sub
    # group of point-pairs per fori iteration: bounds live ranges while keeping LLO visibility
    group = 4 if npc % 4 == 0 else (2 if npc % 2 == 0 else 1)
    n_groups = npc // group

    wt = wt_ref[...]                                       # VMEM-resident across the whole grid
    # bias lane-broadcast hoisted out of the sub-block loop (JAX does not CSE broadcast_in_dim)
    bias_b = jnp.broadcast_to(b_ref[...].astype(jnp.float32), (cout, sub))

    @pl.loop(0, ns)
    def _(s):                                              # sub-blocks of SUB_P pillars
        def chunk_max(n):
            # one MXU dot covers `chunk` points: (COUT, CIN) @ (CIN, chunk*SUB) -> f32
            r = jnp.dot(wt, f_ref[s, n], preferred_element_type=jnp.float32)
            m = r[:, :sub]
            for c in range(1, chunk):                      # 128-lane aligned halves: pure VPU max
                m = jnp.maximum(m, r[:, c * sub:(c + 1) * sub])
            return m

        def group_body(g, acc):
            base = g * group
            for j in range(group):                         # static inner unroll within the group
                acc = jnp.maximum(acc, chunk_max(base + j))
            return acc

        acc = chunk_max(0)
        for j in range(1, group):
            acc = jnp.maximum(acc, chunk_max(j))
        if n_groups > 1:
            acc = lax.fori_loop(1, n_groups, group_body, acc)

        # bias + ReLU hoisted past the max: exact, and 32x less VPU epilogue work
        o_ref[s] = jnp.maximum(acc + bias_b, 0.0).astype(o_ref.dtype)


def _pfn_pallas(feats4, wt, bias_col, *, tile_p, out_dtype):
    """feats4: (T, NPC, CIN, CHUNK*SUB_P) -> (T, COUT, SUB_P) in out_dtype."""
    T, NPC, CIN, CSUB = feats4.shape
    COUT = wt.shape[0]
    assert CSUB % SUB_P == 0 and tile_p % SUB_P == 0
    ns = tile_p // SUB_P
    assert T % ns == 0
    return pl.pallas_call(
        pfn_kernel,
        out_shape=jax.ShapeDtypeStruct((T, COUT, SUB_P), out_dtype),
        grid_spec=pltpu.PrefetchScalarGridSpec(
            num_scalar_prefetch=0,
            grid=(T // ns,),
            in_specs=[
                pl.BlockSpec((ns, NPC, CIN, CSUB), lambda i: (i, 0, 0, 0)),
                pl.BlockSpec((COUT, CIN), lambda i: (0, 0)),   # constant -> VMEM-resident
                pl.BlockSpec((COUT, 1), lambda i: (0, 0)),     # constant -> VMEM-resident
            ],
            out_specs=pl.BlockSpec((ns, COUT, SUB_P), lambda i: (i, 0, 0)),
        ),
        compiler_params=pltpu.CompilerParams(
            dimension_semantics=("parallel",),                 # sharded across v7x's 2 TCs
            vmem_limit_bytes=32 * 1024 * 1024,                 # ~13 MiB used at tile_p=8192 (bf16)
        ),
    )(feats4, wt, bias_col)


def _pick_tile_p(P, max_tile=TILE_P_MAX):
    # keep >= 2 grid steps whenever P allows (dual TensorCores on v7x), cap so double-buffered
    # VMEM stays well inside 64 MiB (v7x) while amortizing the ~0.35 us per-grid-step cost.
    half = pl.cdiv(pl.cdiv(max(P, 1), 2), SUB_P) * SUB_P
    return int(max(SUB_P, min(max_tile, half)))


@partial(jax.jit, static_argnames=("tile_p", "chunk", "compute_dtype"))
def _pfn_device(features, wt_f32, bias_col, *, tile_p, chunk, compute_dtype):
    """features (P, NP, CIN) -> (P, COUT) f32; relayout + kernel + un-layout all on device."""
    P, NP, CIN = features.shape
    COUT = wt_f32.shape[0]
    npc = NP // chunk
    Ppad = pl.cdiv(P, tile_p) * tile_p
    x = jnp.pad(features.astype(compute_dtype), ((0, Ppad - P), (0, 0), (0, 0)))
    T = Ppad // SUB_P
    # (Ppad, NP, CIN) -> (T, SUB, NPC, CHUNK, CIN) -> (T, NPC, CIN, CHUNK, SUB) -> merge lanes
    x = x.reshape(T, SUB_P, npc, chunk, CIN)
    feats4 = jnp.transpose(x, (0, 2, 4, 3, 1)).reshape(T, npc, CIN, chunk * SUB_P)
    out4 = _pfn_pallas(feats4, wt_f32.astype(compute_dtype), bias_col,
                       tile_p=tile_p, out_dtype=compute_dtype)          # bf16 writeback by default
    out = jnp.transpose(out4, (0, 2, 1)).reshape(Ppad, COUT).astype(jnp.float32)
    return out[:P]


def pfn_forward(features, W, bn_scale, bn_bias, *, tile_p=None, compute_dtype=jnp.bfloat16):
    """PFNLayer equivalent: features (P, NP, CIN) -> (P, COUT) float32."""
    features = jnp.asarray(features)
    P, NP, CIN = features.shape
    COUT = W.shape[1]
    if tile_p is None:
        tile_p = _pick_tile_p(P)
    chunk = POINT_CHUNK if NP % POINT_CHUNK == 0 else 1
    wt = (jnp.asarray(W, jnp.float32) * jnp.asarray(bn_scale, jnp.float32).reshape(1, COUT)).T
    bias_col = jnp.asarray(bn_bias, jnp.float32).reshape(COUT, 1)
    return _pfn_device(features, wt, bias_col, tile_p=int(tile_p), chunk=chunk,
                       compute_dtype=compute_dtype)


@partial(jax.jit, static_argnames=("batch_size", "nx", "ny", "nz", "num_pv"))
def _scatter_feature_maps(pv, flat_idx, *, batch_size, nx, ny, nz, num_pv):
    # single batched row scatter (pillar keys are unique, matching torch's index_put semantics)
    S = nz * ny * nx
    fm = jnp.zeros((batch_size * S, num_pv), jnp.float32)
    fm = fm.at[flat_idx].set(pv)
    x = jnp.transpose(fm.reshape(batch_size, S, num_pv), (0, 2, 1))   # (B, num_pv, nz*ny*nx)
    return x.reshape(batch_size, num_pv * nz, ny, nx)


# ----------------------------- host-side glue -----------------------------
# TODO(synk): spconv's PointToVoxel is a dynamic hash-map voxelizer with no clean Pallas
# equivalent; reproduced deterministically on host in numpy (first-occurrence voxel order).
def point_to_voxel(points, vsize, crange, max_voxels, max_points, num_features):
    crange = np.asarray(crange, np.float32)
    vsize = np.asarray(vsize, np.float32)
    grid = np.round((crange[3:6] - crange[0:3]) / vsize).astype(np.int64)  # (nx, ny, nz)
    cxyz = np.floor((points[:, :3] - crange[:3]) / vsize).astype(np.int64)
    valid = np.all((cxyz >= 0) & (cxyz < grid[None, :]), axis=1)

    voxel_map = {}
    voxels, coords_out, num_points = [], [], []
    for i in np.nonzero(valid)[0]:
        key = (int(cxyz[i, 2]), int(cxyz[i, 1]), int(cxyz[i, 0]))  # (z, y, x) order
        if key not in voxel_map:
            if len(voxels) >= max_voxels:
                continue
            voxel_map[key] = len(voxels)
            voxels.append(np.zeros((max_points, num_features), np.float32))
            coords_out.append(np.array(key, np.int64))
            num_points.append(0)
        vid = voxel_map[key]
        n = num_points[vid]
        if n < max_points:
            voxels[vid][n] = points[i, :num_features]
            num_points[vid] = n + 1
    return np.stack(voxels, 0), np.stack(coords_out, 0), np.array(num_points, np.int64)


def pfe_forward(batch_dict, W, bn_scale, bn_bias, cfg, point_cloud_range, in_channels=0,
                *, tile_p=None, compute_dtype=jnp.bfloat16):
    pillar_size = np.asarray(cfg['pillar_size'], np.float32)
    pcr = np.asarray(point_cloud_range, np.float32)
    grid_size = np.round((pcr[3:6] - pcr[0:3]) / pillar_size).astype(np.int64)
    nx, ny, nz = int(grid_size[0]), int(grid_size[1]), int(grid_size[2])
    px, py, pz = (float(v) for v in pillar_size)
    x_off = px / 2 + float(pcr[0])
    y_off = py / 2 + float(pcr[1])
    z_off = pz / 2 + float(pcr[2])
    num_pv_features = cfg['filters'][-1]
    base_channels = 4

    batch_points = np.asarray(batch_dict['colored_points'], np.float32)[:, 0:5]
    batch_size = batch_dict['batch_size']
    if in_channels > 0:
        batch_points = np.concatenate(
            [batch_points, np.asarray(batch_dict['rv_features'], np.float32)], axis=-1)

    batch_pillars, batch_coords = [], []
    for b in range(batch_size):
        mask = batch_points[:, 0] == b
        pts = batch_points[mask]
        pillars, coords, num_pts = point_to_voxel(
            pts[:, 1:], pillar_size, pcr,
            max_voxels=40000, max_points=32,
            num_features=base_channels + in_channels)
        xyz = pillars[:, :, :3]
        xyz_mean = xyz.sum(axis=1, keepdims=True) / num_pts.astype(np.float32).reshape(-1, 1, 1)
        xyz_to_cluster = xyz - xyz_mean
        xyz_to_center = np.zeros_like(xyz)
        xyz_to_center[:, :, 0] = xyz[:, :, 0] - (coords[:, 2:3].astype(np.float32) * px + x_off)
        xyz_to_center[:, :, 1] = xyz[:, :, 1] - (coords[:, 1:2].astype(np.float32) * py + y_off)
        xyz_to_center[:, :, 2] = xyz[:, :, 2] - (coords[:, 0:1].astype(np.float32) * pz + z_off)
        pillars = np.concatenate([pillars, xyz_to_cluster, xyz_to_center], axis=-1)
        batch_pillars.append(pillars)
        coords = np.concatenate(
            [np.full((coords.shape[0], 1), b, coords.dtype), coords], axis=-1)
        batch_coords.append(coords)

    all_pillars = np.concatenate(batch_pillars, axis=0).astype(np.float32)   # (P, NP, CIN)
    all_coords = np.concatenate(batch_coords, axis=0)                        # (P, 4) = (b, z, y, x)

    # NOTE: bf16 quantizes the raw absolute x/y channels; fine for this range — for very large
    # point_cloud_range keep compute_dtype=float32 or pre-center coordinates before casting.
    feats_dev = jnp.asarray(all_pillars, dtype=compute_dtype)   # compact tensor over PCIe
    batch_pv = pfn_forward(feats_dev, W, bn_scale, bn_bias,
                           tile_p=tile_p, compute_dtype=compute_dtype)       # (P, COUT) f32

    # NOTE: index formula replicated verbatim from the PyTorch module (z + y*nx + x).
    S = nz * ny * nx
    flat_idx = (all_coords[:, 0] * S
                + all_coords[:, 1] + all_coords[:, 2] * nx + all_coords[:, 3]).astype(np.int32)
    x = _scatter_feature_maps(batch_pv, jnp.asarray(flat_idx),
                              batch_size=batch_size, nx=nx, ny=ny, nz=nz,
                              num_pv=num_pv_features)
    batch_dict['pv_features'] = x
    return batch_dict


if __name__ == "__main__":
    cfg = {'pillar_size': [0.4, 0.4, 2.0], 'filters': [64]}
    point_cloud_range = np.array([0.0, 0.0, -1.0, 6.4, 6.4, 1.0], np.float32)  # -> grid 16x16x1
    in_channels = 0
    C_in = 4 + 6 + in_channels
    C_out = cfg['filters'][-1]

    key = jax.random.PRNGKey(0)
    kw, kg, kb, km, kv, kp = jax.random.split(key, 6)
    W = (0.1 * jax.random.normal(kw, (C_in, C_out))).astype(jnp.float32)   # nn.Linear (bias=False), stored (in, out)
    gamma = (1.0 + 0.1 * jax.random.normal(kg, (C_out,))).astype(jnp.float32)
    beta = (0.1 * jax.random.normal(kb, (C_out,))).astype(jnp.float32)
    running_mean = (0.05 * jax.random.normal(km, (C_out,))).astype(jnp.float32)
    running_var = (1.0 + 0.1 * jax.random.uniform(kv, (C_out,))).astype(jnp.float32)
    eps = 1e-3
    bn_scale = gamma / jnp.sqrt(running_var + eps)   # BatchNorm1d folded (eval mode)
    bn_bias = beta - running_mean * bn_scale

    # deterministic synthetic point cloud: (batch_idx, x, y, z, intensity)
    batch_size = 2
    pts_per_batch = 256
    kx, kz, ki = jax.random.split(kp, 3)
    xy = jax.random.uniform(kx, (batch_size * pts_per_batch, 2), minval=0.05, maxval=6.35)
    z = jax.random.uniform(kz, (batch_size * pts_per_batch, 1), minval=-0.95, maxval=0.95)
    inten = jax.random.uniform(ki, (batch_size * pts_per_batch, 1))
    bidx = np.repeat(np.arange(batch_size), pts_per_batch).reshape(-1, 1).astype(np.float32)
    colored_points = np.concatenate(
        [bidx, np.asarray(xy), np.asarray(z), np.asarray(inten)], axis=-1).astype(np.float32)

    batch_dict = {'colored_points': colored_points, 'batch_size': batch_size}
    out = pfe_forward(batch_dict, W, bn_scale, bn_bias, cfg, point_cloud_range, in_channels)
    pv = out['pv_features']
    jax.block_until_ready(pv)
    assert pv.shape == (batch_size, C_out * 1, 16, 16), pv.shape

    # numerical cross-check of the Pallas PFN kernel against a plain-JAX reference
    # (reference keeps the original op order: Linear -> BN affine -> ReLU -> max over points)
    kchk = jax.random.PRNGKey(7)
    feats_chk = jax.random.normal(kchk, (1200, 32, C_in), jnp.float32)
    ref = jnp.max(
        jnp.maximum(jnp.einsum('pnc,cd->pnd', feats_chk, W) * bn_scale + bn_bias, 0.0),
        axis=1)

    # f32 path: only float reassociation from the scale-fold / post-max epilogue
    got_f32 = pfn_forward(feats_chk, W, bn_scale, bn_bias, tile_p=512,
                          compute_dtype=jnp.float32)
    np.testing.assert_allclose(np.asarray(got_f32), np.asarray(ref), rtol=2e-3, atol=2e-3)

    # bf16 path (default for the PFE pipeline): looser tolerance for input/output quantization
    got_bf16 = pfn_forward(feats_chk, W, bn_scale, bn_bias,
                           compute_dtype=jnp.bfloat16)        # auto tile_p (multi-step grid)
    np.testing.assert_allclose(np.asarray(got_bf16), np.asarray(ref), rtol=3e-2, atol=3e-2)

    print("KERNEL_OK")
</pallas_src>

<mosaic_0001>
module attributes {stable_mosaic.version = 11 : i64} {
  func.func @pfn_kernel(%arg0: i32, %arg1: memref<1x16x10x512xbf16, #tpu.memory_space<vmem>>, %arg2: memref<64x10xbf16, #tpu.memory_space<vmem>>, %arg3: memref<64x1xf32, #tpu.memory_space<vmem>>, %arg4: memref<1x64x256xbf16, #tpu.memory_space<vmem>>) attributes {dimension_semantics = [#tpu.dimension_semantics<parallel>], iteration_bounds = array<i64: 2>, scalar_prefetch = 0 : i64, scratch_operands = 0 : i64, tpu.core_type = #tpu.core_type<tc>, window_params = [{transform_indices = @transform_0, window_bounds = array<i64: 1, 16, 10, 512>}, {pipeline_mode = #tpu.pipeline_mode<synchronous>, transform_indices = @transform_1, window_bounds = array<i64: 64, 10>}, {pipeline_mode = #tpu.pipeline_mode<synchronous>, transform_indices = @transform_2, window_bounds = array<i64: 64, 1>}, {transform_indices = @transform_3, window_bounds = array<i64: 1, 64, 256>}]} {
    %c0 = arith.constant 0 : index
    %c0_0 = arith.constant 0 : index
    %0 = vector.load %arg2[%c0, %c0_0] : memref<64x10xbf16, #tpu.memory_space<vmem>>, vector<64x10xbf16>
    %c0_1 = arith.constant 0 : index
    %c0_2 = arith.constant 0 : index
    %1 = vector.load %arg3[%c0_1, %c0_2] : memref<64x1xf32, #tpu.memory_space<vmem>>, vector<64x1xf32>
    %2 = vector.shape_cast %1 : vector<64x1xf32> to vector<64x1xf32>
    %3 = vector.broadcast %2 : vector<64x1xf32> to vector<64x256xf32>
    %c0_i32 = arith.constant 0 : i32
    %c1_i32 = arith.constant 1 : i32
    %4 = arith.muli %c0_i32, %c1_i32 : i32
    %c0_i32_3 = arith.constant 0 : i32
    %5 = arith.addi %c0_i32_3, %4 : i32
    %6 = arith.index_cast %5 : i32 to index
    %c0_4 = arith.constant 0 : index
    %c0_5 = arith.constant 0 : index
    %c0_6 = arith.constant 0 : index
    %7 = vector.load %arg1[%6, %c0_4, %c0_5, %c0_6] : memref<1x16x10x512xbf16, #tpu.memory_space<vmem>>, vector<1x1x10x512xbf16>
    %8 = vector.shape_cast %7 : vector<1x1x10x512xbf16> to vector<10x512xbf16>
    %cst = arith.constant dense<0.000000e+00> : vector<64x512xf32>
    %9 = tpu.matmul %0, %8, %cst {dimension_numbers = #tpu.dot_dimension_numbers<[1], [0], [0], [1], [0, 0, 1, 1], [], []>} : vector<64x10xbf16>, vector<10x512xbf16>, vector<64x512xf32> -> vector<64x512xf32>
    %10 = vector.extract_strided_slice %9 {offsets = [0, 0], sizes = [64, 256], strides = [1, 1]} : vector<64x512xf32> to vector<64x256xf32>
    %11 = vector.extract_strided_slice %9 {offsets = [0, 256], sizes = [64, 256], strides = [1, 1]} : vector<64x512xf32> to vector<64x256xf32>
    %12 = arith.maximumf %10, %11 : vector<64x256xf32>
    %13 = arith.index_cast %5 : i32 to index
    %c1 = arith.constant 1 : index
    %c0_7 = arith.constant 0 : index
    %c0_8 = arith.constant 0 : index
    %14 = vector.load %arg1[%13, %c1, %c0_7, %c0_8] : memref<1x16x10x512xbf16, #tpu.memory_space<vmem>>, vector<1x1x10x512xbf16>
    %15 = vector.shape_cast %14 : vector<1x1x10x512xbf16> to vector<10x512xbf16>
    %cst_9 = arith.constant dense<0.000000e+00> : vector<64x512xf32>
    %16 = tpu.matmul %0, %15, %cst_9 {dimension_numbers = #tpu.dot_dimension_numbers<[1], [0], [0], [1], [0, 0, 1, 1], [], []>} : vector<64x10xbf16>, vector<10x512xbf16>, vector<64x512xf32> -> vector<64x512xf32>
    %17 = vector.extract_strided_slice %16 {offsets = [0, 0], sizes = [64, 256], strides = [1, 1]} : vector<64x512xf32> to vector<64x256xf32>
    %18 = vector.extract_strided_slice %16 {offsets = [0, 256], sizes = [64, 256], strides = [1, 1]} : vector<64x512xf32> to vector<64x256xf32>
    %19 = arith.maximumf %17, %18 : vector<64x256xf32>
    %20 = arith.maximumf %12, %19 : vector<64x256xf32>
    %21 = arith.index_cast %5 : i32 to index
    %c2 = arith.constant 2 : index
    %c0_10 = arith.constant 0 : index
    %c0_11 = arith.constant 0 : index
    %22 = vector.load %arg1[%21, %c2, %c0_10, %c0_11] : memref<1x16x10x512xbf16, #tpu.memory_space<vmem>>, vector<1x1x10x512xbf16>
    %23 = vector.shape_cast %22 : vector<1x1x10x512xbf16> to vector<10x512xbf16>
    %cst_12 = arith.constant dense<0.000000e+00> : vector<64x512xf32>
    %24 = tpu.matmul %0, %23, %cst_12 {dimension_numbers = #tpu.dot_dimension_numbers<[1], [0], [0], [1], [0, 0, 1, 1], [], []>} : vector<64x10xbf16>, vector<10x512xbf16>, vector<64x512xf32> -> vector<64x512xf32>
    %25 = vector.extract_strided_slice %24 {offsets = [0, 0], sizes = [64, 256], strides = [1, 1]} : vector<64x512xf32> to vector<64x256xf32>
    %26 = vector.extract_strided_slice %24 {offsets = [0, 256], sizes = [64, 256], strides = [1, 1]} : vector<64x512xf32> to vector<64x256xf32>
    %27 = arith.maximumf %25, %26 : vector<64x256xf32>
    %28 = arith.maximumf %20, %27 : vector<64x256xf32>
    %29 = arith.index_cast %5 : i32 to index
    %c3 = arith.constant 3 : index
    %c0_13 = arith.constant 0 : index
    %c0_14 = arith.constant 0 : index
    %30 = vector.load %arg1[%29, %c3, %c0_13, %c0_14] : memref<1x16x10x512xbf16, #tpu.memory_space<vmem>>, vector<1x1x10x512xbf16>
    %31 = vector.shape_cast %30 : vector<1x1x10x512xbf16> to vector<10x512xbf16>
    %cst_15 = arith.constant dense<0.000000e+00> : vector<64x512xf32>
    %32 = tpu.matmul %0, %31, %cst_15 {dimension_numbers = #tpu.dot_dimension_numbers<[1], [0], [0], [1], [0, 0, 1, 1], [], []>} : vector<64x10xbf16>, vector<10x512xbf16>, vector<64x512xf32> -> vector<64x512xf32>
    %33 = vector.extract_strided_slice %32 {offsets = [0, 0], sizes = [64, 256], strides = [1, 1]} : vector<64x512xf32> to vector<64x256xf32>
    %34 = vector.extract_strided_slice %32 {offsets = [0, 256], sizes = [64, 256], strides = [1, 1]} : vector<64x512xf32> to vector<64x256xf32>
    %35 = arith.maximumf %33, %34 : vector<64x256xf32>
    %36 = arith.maximumf %28, %35 : vector<64x256xf32>
    %c1_i32_16 = arith.constant 1 : i32
    %c3_i32 = arith.constant 3 : i32
    %37 = arith.addi %c1_i32_16, %c3_i32 : i32
    %c1_i32_17 = arith.constant 1 : i32
    %38 = scf.for %arg5 = %c1_i32_16 to %37 step %c1_i32_17 iter_args(%arg6 = %36) -> (vector<64x256xf32>)  : i32 {
      %c4_i32 = arith.constant 4 : i32
      %47 = arith.muli %arg5, %c4_i32 : i32
      %c0_i32_23 = arith.constant 0 : i32
      %48 = arith.addi %47, %c0_i32_23 : i32
      %49 = arith.index_cast %5 : i32 to index
      %50 = arith.index_cast %48 : i32 to index
      %c0_24 = arith.constant 0 : index
      %c0_25 = arith.constant 0 : index
      %51 = vector.load %arg1[%49, %50, %c0_24, %c0_25] : memref<1x16x10x512xbf16, #tpu.memory_space<vmem>>, vector<1x1x10x512xbf16>
      %52 = vector.shape_cast %51 : vector<1x1x10x512xbf16> to vector<10x512xbf16>
      %cst_26 = arith.constant dense<0.000000e+00> : vector<64x512xf32>
      %53 = tpu.matmul %0, %52, %cst_26 {dimension_numbers = #tpu.dot_dimension_numbers<[1], [0], [0], [1], [0, 0, 1, 1], [], []>} : vector<64x10xbf16>, vector<10x512xbf16>, vector<64x512xf32> -> vector<64x512xf32>
      %54 = vector.extract_strided_slice %53 {offsets = [0, 0], sizes = [64, 256], strides = [1, 1]} : vector<64x512xf32> to vector<64x256xf32>
      %55 = vector.extract_strided_slice %53 {offsets = [0, 256], sizes = [64, 256], strides = [1, 1]} : vector<64x512xf32> to vector<64x256xf32>
      %56 = arith.maximumf %54, %55 : vector<64x256xf32>
      %57 = arith.maximumf %arg6, %56 : vector<64x256xf32>
      %c1_i32_27 = arith.constant 1 : i32
      %58 = arith.addi %47, %c1_i32_27 : i32
      %59 = arith.index_cast %5 : i32 to index
      %60 = arith.index_cast %58 : i32 to index
      %c0_28 = arith.constant 0 : index
      %c0_29 = arith.constant 0 : index
      %61 = vector.load %arg1[%59, %60, %c0_28, %c0_29] : memref<1x16x10x512xbf16, #tpu.memory_space<vmem>>, vector<1x1x10x512xbf16>
      %62 = vector.shape_cast %61 : vector<1x1x10x512xbf16> to vector<10x512xbf16>
      %cst_30 = arith.constant dense<0.000000e+00> : vector<64x512xf32>
      %63 = tpu.matmul %0, %62, %cst_30 {dimension_numbers = #tpu.dot_dimension_numbers<[1], [0], [0], [1], [0, 0, 1, 1], [], []>} : vector<64x10xbf16>, vector<10x512xbf16>, vector<64x512xf32> -> vector<64x512xf32>
      %64 = vector.extract_strided_slice %63 {offsets = [0, 0], sizes = [64, 256], strides = [1, 1]} : vector<64x512xf32> to vector<64x256xf32>
      %65 = vector.extract_strided_slice %63 {offsets = [0, 256], sizes = [64, 256], strides = [1, 1]} : vector<64x512xf32> to vector<64x256xf32>
      %66 = arith.maximumf %64, %65 : vector<64x256xf32>
      %67 = arith.maximumf %57, %66 : vector<64x256xf32>
      %c2_i32 = arith.constant 2 : i32
      %68 = arith.addi %47, %c2_i32 : i32
      %69 = arith.index_cast %5 : i32 to index
      %70 = arith.index_cast %68 : i32 to index
      %c0_31 = arith.constant 0 : index
      %c0_32 = arith.constant 0 : index
      %71 = vector.load %arg1[%69, %70, %c0_31, %c0_32] : memref<1x16x10x512xbf16, #tpu.memory_space<vmem>>, vector<1x1x10x512xbf16>
      %72 = vector.shape_cast %71 : vector<1x1x10x512xbf16> to vector<10x512xbf16>
      %cst_33 = arith.constant dense<0.000000e+00> : vector<64x512xf32>
      %73 = tpu.matmul %0, %72, %cst_33 {dimension_numbers = #tpu.dot_dimension_numbers<[1], [0], [0], [1], [0, 0, 1, 1], [], []>} : vector<64x10xbf16>, vector<10x512xbf16>, vector<64x512xf32> -> vector<64x512xf32>
      %74 = vector.extract_strided_slice %73 {offsets = [0, 0], sizes = [64, 256], strides = [1, 1]} : vector<64x512xf32> to vector<64x256xf32>
      %75 = vector.extract_strided_slice %73 {offsets = [0, 256], sizes = [64, 256], strides = [1, 1]} : vector<64x512xf32> to vector<64x256xf32>
      %76 = arith.maximumf %74, %75 : vector<64x256xf32>
      %77 = arith.maximumf %67, %76 : vector<64x256xf32>
      %c3_i32_34 = arith.constant 3 : i32
      %78 = arith.addi %47, %c3_i32_34 : i32
      %79 = arith.index_cast %5 : i32 to index
      %80 = arith.index_cast %78 : i32 to index
      %c0_35 = arith.constant 0 : index
      %c0_36 = arith.constant 0 : index
      %81 = vector.load %arg1[%79, %80, %c0_35, %c0_36] : memref<1x16x10x512xbf16, #tpu.memory_space<vmem>>, vector<1x1x10x512xbf16>
      %82 = vector.shape_cast %81 : vector<1x1x10x512xbf16> to vector<10x512xbf16>
      %cst_37 = arith.constant dense<0.000000e+00> : vector<64x512xf32>
      %83 = tpu.matmul %0, %82, %cst_37 {dimension_numbers = #tpu.dot_dimension_numbers<[1], [0], [0], [1], [0, 0, 1, 1], [], []>} : vector<64x10xbf16>, vector<10x512xbf16>, vector<64x512xf32> -> vector<64x512xf32>
      %84 = vector.extract_strided_slice %83 {offsets = [0, 0], sizes = [64, 256], strides = [1, 1]} : vector<64x512xf32> to vector<64x256xf32>
      %85 = vector.extract_strided_slice %83 {offsets = [0, 256], sizes = [64, 256], strides = [1, 1]} : vector<64x512xf32> to vector<64x256xf32>
      %86 = arith.maximumf %84, %85 : vector<64x256xf32>
      %87 = arith.maximumf %77, %86 : vector<64x256xf32>
      scf.yield %87 : vector<64x256xf32>
    }
    %c3_i32_18 = arith.constant 3 : i32
    %39 = arith.addf %38, %3 : vector<64x256xf32>
    %cst_19 = arith.constant 0.000000e+00 : f32
    %40 = vector.broadcast %cst_19 : f32 to vector<64x256xf32>
    %41 = arith.maximumf %39, %40 : vector<64x256xf32>
    %42 = arith.truncf %41 : vector<64x256xf32> to vector<64x256xbf16>
    %43 = arith.index_cast %5 : i32 to index
    %c0_20 = arith.constant 0 : index
    %c0_21 = arith.constant 0 : index
    %44 = vector.load %arg4[%43, %c0_20, %c0_21] : memref<1x64x256xbf16, #tpu.memory_space<vmem>>, vector<1x64x256xbf16>
    %45 = vector.shape_cast %44 : vector<1x64x256xbf16> to vector<64x256xbf16>
    %46 = vector.shape_cast %42 : vector<64x256xbf16> to vector<1x64x256xbf16>
    tpu.vector_store %arg4[%43, %c0_20, %c0_21], %46 {strides = array<i32>} : memref<1x64x256xbf16, #tpu.memory_space<vmem>>, vector<1x64x256xbf16>,
    %c1_i32_22 = arith.constant 1 : i32
    return
  }
  func.func @transform_0(%arg0: i32) -> (i32, i32, i32, i32) {
    %c0_i32 = arith.constant 0 : i32
    %c0_i32_0 = arith.constant 0 : i32
    %c0_i32_1 = arith.constant 0 : i32
    %c0_i32_2 = arith.constant 0 : i32
    return %arg0, %c0_i32, %c0_i32_0, %c0_i32_1 : i32, i32, i32, i32
  }
  func.func @transform_1(%arg0: i32) -> (i32, i32) {
    %c0_i32 = arith.constant 0 : i32
    %c0_i32_0 = arith.constant 0 : i32
    %c0_i32_1 = arith.constant 0 : i32
    return %c0_i32, %c0_i32_0 : i32, i32
  }
  func.func @transform_2(%arg0: i32) -> (i32, i32) {
    %c0_i32 = arith.constant 0 : i32
    %c0_i32_0 = arith.constant 0 : i32
    %c0_i32_1 = arith.constant 0 : i32
    return %c0_i32, %c0_i32_0 : i32, i32
  }
  func.func @transform_3(%arg0: i32) -> (i32, i32, i32) {
    %c0_i32 = arith.constant 0 : i32
    %c0_i32_0 = arith.constant 0 : i32
    %c0_i32_1 = arith.constant 0 : i32
    return %arg0, %c0_i32, %c0_i32_0 : i32, i32, i32
  }
}

</mosaic_0001>

<bundles_post_ra>
// kernel: _pfn_device.1
= control target key start
LH: loop header
LB: loop body
LE: loop exit
PB: predicated region body
PF: predicated region fallthrough
CT: control target
= control target key end

     0   :  { %s2726_s12 = smov 0   ;;  %s3646_s0 = inlined_call_operand.vmem [shape: bf16[2,16,10,512], index: 0, kind: input, shape index: {}]   ;;  %s3647_s1 = inlined_call_operand.vmem [shape: bf16[64,10], index: 1, kind: input, shape index: {}]   ;;  %s3648_s2 = inlined_call_operand.vmem [shape: f32[64,1], index: 2, kind: input, shape index: {}]   ;;  %s3649_s3 = inlined_call_operand.vmem [shape: bf16[2,64,256], index: 3, kind: output, shape index: {}]  }
   0x1 LB: > { %s2177_s13 = sadd.s32 4294967295, %s2634_s12   ;;  %p2181_p0 = scmp.ge.s32.totalorder %s2634_s12, 1  ;;  %s2634_s12 = sphi %s2726_s12, %s13_s12  }
   0x2   : > { %p137_p1 = scmp.lt.s32.totalorder %s2634_s12, 3 }
   0x4   : > { %p138_p2 = pnand %p2181_p0, %p137_p1 }
   0x6   : > { %141 = sbr.rel (%p138_p2) target bundleno = 684 (0x2ac), region = 32 }
   0xb   : > { %p161_p3 = scmp.lt.s32.totalorder %s2177_s13, 1  ;;  %v2704_v0 = vmov 0   ;;  %vm281_vm0 = vcmask 1044480   ;;  %vm268_vm1 = vcmask 80896   ;;  %v2756_v5 = vld [vmem:[%s3647_s1] sm:$0xff]   ;;  %v182_v16 = vld [vmem:[%s3648_s2 + $0x10] sm:$0xff] }
   0xc   : > { %326 = vmatprep.mubr.bf16.mxu0 %v2704_v0  ;;  %399 = vmatprep.mubr.bf16.mxu1 %v2704_v0  ;;  %3675 = vst [vmem:[#allocation2_spill] sm:$0xff] %v2756_v5  ;;  %v180_v17 = vld [vmem:[%s3648_s2] sm:$0xff]  ;;  %v2788_v18 = vld [vmem:[%s3647_s1 + $0x8] sm:$0xff]   ;;  %v183_v23 = vld [vmem:[%s3648_s2 + $0x18] sm:$0xff]  ;;  %s3143_s22 = smov 1  }
   0xd   : > { %s3760_s13 = smov (!%p161_p3, %s2177_s13), 1  ;;  %2507 = vset.pattern.permute.xlu1 %v2704_v0  ;;  %2506 = vset.pattern.permute.xlu0 %v2704_v0  ;;  %3676 = vst [vmem:[#allocation3_spill] sm:$0xff] %v2788_v18  ;;  %v181_v24 = vld [vmem:[%s3648_s2 + $0x8] sm:$0xff]  ;;  %v184_v26 = vld [vmem:[%s3648_s2 + $0x20] sm:$0xff]  ;;  %v2815_v27 = vld [vmem:[%s3647_s1 + $0x10] sm:$0xff]  }
   0xe   : > { %s2345_s14 = sshll.u32 %s3760_s13, 9  ;;  %s2346_s15 = sshll.u32 %s3760_s13, 6  ;;  %200 = vperm.xlu1 %2507, %v182_v16   ;;  %190 = vperm.xlu0 %2506, %v180_v17   ;;  %v185_v25 = vld [vmem:[%s3648_s2 + $0x28] sm:$0xff]  ;;  %3677 = vst [vmem:[#allocation4_spill] sm:$0xff] %v2815_v27  ;;  %v187_v28 = vld [vmem:[%s3648_s2 + $0x38] sm:$0xff]  ;;  %v186_v29 = vld [vmem:[%s3648_s2 + $0x30] sm:$0xff] }
   0xf   : > { %s2741_s18 = scalar_lea.vmem %s3646_s0, %s2345_s14  ;;  %s2746_s21 = scalar_lea.vmem %s3649_s3, %s2346_s15  ;;  %v2832_v30 = vld [vmem:[%s3647_s1 + $0x18] sm:$0xff]  }
  0x10   : > { %v2508_v1 = vld [vmem:[%s2741_s18 + $0x4] ss:$16 sps:$4 sm:$0x1f]   ;;  %v2510_v2 = vld [vmem:[%s2741_s18 + $0xc] ss:$16 sps:$4 sm:$0x1f]  }
  0x11   : > { %2194 = vmatprep.subr.msk.bf16.mxu0 %vm281_vm0, %v2508_v1  ;;  %v2512_v3 = vld [vmem:[%s2741_s18] ss:$16 sps:$4 sm:$0x1f]   ;;  %v2513_v4 = vld [vmem:[%s2741_s18 + $0x8] ss:$16 sps:$4 sm:$0x1f]   ;;  %2199 = vmatprep.subr.msk.bf16.mxu1 %vm281_vm0, %v2510_v2 }
  0x12   : > { %v2515_v6 = vld [vmem:[%s2741_s18 + $0x24] ss:$16 sps:$4 sm:$0x1f]   ;;  %v283_v7 = vsel %vm281_vm0, %v2512_v3, 0  ;;  %v289_v8 = vsel %vm281_vm0, %v2513_v4, 0  ;;  %205 = vperm.xlu1 %2507, %v183_v23   ;;  %195 = vperm.xlu0 %2506, %v181_v24   ;;  %3678 = vst [vmem:[#allocation5_spill] sm:$0xff] %v2832_v30 }
  0x13   : > { %309 = vmatpush1.bf16.msra.mxu0 %v283_v7  ;;  %382 = vmatpush1.bf16.msra.mxu1 %v289_v8  ;;  %v2517_v9 = vld [vmem:[%s2741_s18 + $0x2c] ss:$16 sps:$4 sm:$0x1f]   ;;  %v2519_v10 = vld [vmem:[%s2741_s18 + $0x20] ss:$16 sps:$4 sm:$0x1f]  }
  0x14   : > { %2212 = vmatprep.subr.msk.bf16.mxu0 %vm281_vm0, %v2515_v6  ;;  %v2520_v11 = vld [vmem:[%s2741_s18 + $0x28] ss:$16 sps:$4 sm:$0x1f]   ;;  %2217 = vmatprep.subr.msk.bf16.mxu1 %vm281_vm0, %v2517_v9  ;;  %v478_v12 = vsel %vm281_vm0, %v2519_v10, 0 }
  0x15   : > { %v2524_v13 = vld [vmem:[%s2741_s18 + $0x44] ss:$16 sps:$4 sm:$0x1f]   ;;  %v484_v14 = vsel %vm281_vm0, %v2520_v11, 0 }
  0x16   : > { %2195 = vmatmul.mubr.msk.bf16.vlgmr.msra.gmra.mxu0 %vm268_vm1, %v2756_v5  ;;  %2200 = vmatmul.mubr.msk.bf16.vlgmr.msra.gmra.mxu1 %vm268_vm1, %v2756_v5  ;;  %v2526_v15 = vld [vmem:[%s2741_s18 + $0x4c] ss:$16 sps:$4 sm:$0x1f]   ;;  %v2534_v19 = vld [vmem:[%s2741_s18 + $0x60] ss:$16 sps:$4 sm:$0x1f]  }
  0x17   : > { %504 = vmatpush1.bf16.msra.mxu0 %v478_v12  ;;  %577 = vmatpush1.bf16.msra.mxu1 %v484_v14  ;;  %v2535_v20 = vld [vmem:[%s2741_s18 + $0x68] ss:$16 sps:$4 sm:$0x1f]   ;;  %v900_v21 = vsel %vm281_vm0, %v2534_v19, 0 }
  0x18   : > { %336 = vmatprep.mubr.bf16.mxu0 %v2704_v0  ;;  %409 = vmatprep.mubr.bf16.mxu1 %v2704_v0  ;;  %v906_v22 = vsel %vm281_vm0, %v2535_v20, 0  ;;  %v2528_v31 = vld [vmem:[%s2741_s18 + $0x40] ss:$16 sps:$4 sm:$0x1f]  }
  0x19   : > { %2230 = vmatprep.subr.msk.bf16.mxu0 %vm281_vm0, %v2524_v13  ;;  %2235 = vmatprep.subr.msk.bf16.mxu1 %vm281_vm0, %v2526_v15  ;;  %v2529_v32 = vld [vmem:[%s2741_s18 + $0x48] ss:$16 sps:$4 sm:$0x1f]   ;;  %v689_v33 = vsel %vm281_vm0, %v2528_v31, 0 }
  0x1a   : > { %215 = vperm.xlu1 %2507, %v185_v25   ;;  %210 = vperm.xlu0 %2506, %v184_v26   ;;  %v695_v34 = vsel %vm281_vm0, %v2529_v32, 0  ;;  %v2530_v35 = vld [vmem:[%s2741_s18 + $0x64] ss:$16 sps:$4 sm:$0x1f]  }
  0x1b   : > { %v2532_v36 = vld [vmem:[%s2741_s18 + $0x6c] ss:$16 sps:$4 sm:$0x1f]  }
  0x1e   : > { %2196 = vmatmul.mubr.msk.bf16.gmra.mxu0 %vm268_vm1, %v2788_v18  ;;  %2201 = vmatmul.mubr.msk.bf16.gmra.mxu1 %vm268_vm1, %v2788_v18 }
  0x1f   : > { %346 = vmatprep.mubr.bf16.mxu0 %v2704_v0  ;;  %419 = vmatprep.mubr.bf16.mxu1 %v2704_v0 }
  0x20   : > { %225 = vperm.xlu1 %2507, %v187_v28   ;;  %220 = vperm.xlu0 %2506, %v186_v29  }
  0x26   : > { %2197 = vmatmul.mubr.msk.bf16.gmra.mxu0 %vm268_vm1, %v2815_v27  ;;  %2202 = vmatmul.mubr.msk.bf16.gmra.mxu1 %vm268_vm1, %v2815_v27 }
  0x27   : > { %356 = vmatprep.mubr.bf16.mxu0 %v2704_v0  ;;  %429 = vmatprep.mubr.bf16.mxu1 %v2704_v0 }
  0x2e   : > { %2198 = vmatmul.mubr.msk.bf16.gmra.mxu0 %vm268_vm1, %v2832_v30  ;;  %2203 = vmatmul.mubr.msk.bf16.gmra.mxu1 %vm268_vm1, %v2832_v30 }
  0x2f   : > { %521 = vmatprep.mubr.bf16.mxu0 %v2704_v0  ;;  %594 = vmatprep.mubr.bf16.mxu1 %v2704_v0 }
  0x36   : > { %2213 = vmatmul.mubr.msk.bf16.vlgmr.msra.gmra.mxu0 %vm268_vm1, %v2756_v5  ;;  %2218 = vmatmul.mubr.msk.bf16.vlgmr.msra.gmra.mxu1 %vm268_vm1, %v2756_v5 }
  0x37   : > { %715 = vmatpush1.bf16.msra.mxu0 %v689_v33  ;;  %788 = vmatpush1.bf16.msra.mxu1 %v695_v34 }
  0x38   : > { %531 = vmatprep.mubr.bf16.mxu0 %v2704_v0  ;;  %604 = vmatprep.mubr.bf16.mxu1 %v2704_v0 }
  0x39   : > { %2248 = vmatprep.subr.msk.bf16.mxu0 %vm281_vm0, %v2530_v35  ;;  %2253 = vmatprep.subr.msk.bf16.mxu1 %vm281_vm0, %v2532_v36 }
  0x3e   : > { %2214 = vmatmul.mubr.msk.bf16.gmra.mxu0 %vm268_vm1, %v2788_v18  ;;  %2219 = vmatmul.mubr.msk.bf16.gmra.mxu1 %vm268_vm1, %v2788_v18 }
  0x3f   : > { %541 = vmatprep.mubr.bf16.mxu0 %v2704_v0  ;;  %614 = vmatprep.mubr.bf16.mxu1 %v2704_v0 }
  0x46   : > { %2215 = vmatmul.mubr.msk.bf16.gmra.mxu0 %vm268_vm1, %v2815_v27  ;;  %2220 = vmatmul.mubr.msk.bf16.gmra.mxu1 %vm268_vm1, %v2815_v27 }
  0x47   : > { %551 = vmatprep.mubr.bf16.mxu0 %v2704_v0  ;;  %624 = vmatprep.mubr.bf16.mxu1 %v2704_v0 }
  0x4e   : > { %2216 = vmatmul.mubr.msk.bf16.gmra.mxu0 %vm268_vm1, %v2832_v30  ;;  %2221 = vmatmul.mubr.msk.bf16.gmra.mxu1 %vm268_vm1, %v2832_v30 }
  0x4f   : > { %732 = vmatprep.mubr.bf16.mxu0 %v2704_v0  ;;  %805 = vmatprep.mubr.bf16.mxu1 %v2704_v0 }
  0x56   : > { %2231 = vmatmul.mubr.msk.bf16.vlgmr.msra.gmra.mxu0 %vm268_vm1, %v2756_v5  ;;  %2236 = vmatmul.mubr.msk.bf16.vlgmr.msra.gmra.mxu1 %vm268_vm1, %v2756_v5 }
  0x57   : > { %926 = vmatpush1.bf16.msra.mxu0 %v900_v21  ;;  %999 = vmatpush1.bf16.msra.mxu1 %v906_v22 }
  0x58   : > { %742 = vmatprep.mubr.bf16.mxu0 %v2704_v0  ;;  %815 = vmatprep.mubr.bf16.mxu1 %v2704_v0 }
  0x5e   : > { %2232 = vmatmul.mubr.msk.bf16.gmra.mxu0 %vm268_vm1, %v2788_v18  ;;  %2237 = vmatmul.mubr.msk.bf16.gmra.mxu1 %vm268_vm1, %v2788_v18 }
  0x5f   : > { %752 = vmatprep.mubr.bf16.mxu0 %v2704_v0  ;;  %825 = vmatprep.mubr.bf16.mxu1 %v2704_v0 }
  0x66   : > { %2233 = vmatmul.mubr.msk.bf16.gmra.mxu0 %vm268_vm1, %v2815_v27  ;;  %2238 = vmatmul.mubr.msk.bf16.gmra.mxu1 %vm268_vm1, %v2815_v27 }
  0x67   : > { %762 = vmatprep.mubr.bf16.mxu0 %v2704_v0  ;;  %835 = vmatprep.mubr.bf16.mxu1 %v2704_v0 }
  0x6e   : > { %2234 = vmatmul.mubr.msk.bf16.gmra.mxu0 %vm268_vm1, %v2832_v30  ;;  %2239 = vmatmul.mubr.msk.bf16.gmra.mxu1 %vm268_vm1, %v2832_v30 }
  0x6f   : > { %943 = vmatprep.mubr.bf16.mxu0 %v2704_v0  ;;  %1016 = vmatprep.mubr.bf16.mxu1 %v2704_v0 }
  0x76   : > { %2249 = vmatmul.mubr.msk.bf16.vlgmr.msra.gmra.mxu0 %vm268_vm1, %v2756_v5  ;;  %2254 = vmatmul.mubr.msk.bf16.vlgmr.msra.gmra.mxu1 %vm268_vm1, %v2756_v5 }
  0x77   : > { %953 = vmatprep.mubr.bf16.mxu0 %v2704_v0  ;;  %1026 = vmatprep.mubr.bf16.mxu1 %v2704_v0 }
  0x7e   : > { %2250 = vmatmul.mubr.msk.bf16.gmra.mxu0 %vm268_vm1, %v2788_v18  ;;  %2255 = vmatmul.mubr.msk.bf16.gmra.mxu1 %vm268_vm1, %v2788_v18 }
  0x7f   : > { %963 = vmatprep.mubr.bf16.mxu0 %v2704_v0  ;;  %1036 = vmatprep.mubr.bf16.mxu1 %v2704_v0 }
  0x86   : > { %2251 = vmatmul.mubr.msk.bf16.gmra.mxu0 %vm268_vm1, %v2815_v27  ;;  %2256 = vmatmul.mubr.msk.bf16.gmra.mxu1 %vm268_vm1, %v2815_v27 }
  0x87   : > { %973 = vmatprep.mubr.bf16.mxu0 %v2704_v0  ;;  %1046 = vmatprep.mubr.bf16.mxu1 %v2704_v0 }
  0x89   : > { %v2918_v37 = vpop.permute.xlu1 %200  ;;  %v2920_v38 = vpop.permute.xlu0 %190 }
  0x8a   : > { %3679 = vst [vmem:[#allocation6_spill] sm:$0xff] %v2918_v37  ;;  %3680 = vst [vmem:[#allocation7_spill] sm:$0xff] %v2920_v38 }
  0x8d   : > { %v2922_v39 = vpop.permute.xlu1 %205  ;;  %v2924_v40 = vpop.permute.xlu0 %195 }
  0x8e   : > { %2252 = vmatmul.mubr.msk.bf16.gmra.mxu0 %vm268_vm1, %v2832_v30  ;;  %2257 = vmatmul.mubr.msk.bf16.gmra.mxu1 %vm268_vm1, %v2832_v30  ;;  %3681 = vst [vmem:[#allocation8_spill] sm:$0xff] %v2922_v39  ;;  %3682 = vst [vmem:[#allocation9_spill] sm:$0xff] %v2924_v40 }
  0x95   : > { %v2926_v41 = vpop.permute.xlu1 %215  ;;  %v2928_v42 = vpop.permute.xlu0 %210 }
  0x96   : > { %3683 = vst [vmem:[#allocation10_spill] sm:$0xff] %v2926_v41  ;;  %3684 = vst [vmem:[#allocation11_spill] sm:$0xff] %v2928_v42 }
  0x9b   : > { %v2930_v43 = vpop.permute.xlu1 %225  ;;  %v2932_v44 = vpop.permute.xlu0 %220 }
  0x9c   : > { %3685 = vst [vmem:[#allocation12_spill] sm:$0xff] %v2930_v43  ;;  %3686 = vst [vmem:[#allocation13_spill] sm:$0xff] %v2932_v44 }
  0xd6   : > { %v328_v45 = vpop.f32.mrf.mxu0  ;;  %v401_v46 = vpop.f32.mrf.mxu1 }
  0xd7   : > { %v440_v47 = vmax.f32 %v328_v45, %v401_v46 }
  0xd8   : > { %v330_v48 = vpop.f32.mrf.mxu0  ;;  %v403_v49 = vpop.f32.mrf.mxu1 }
  0xd9   : > { %v441_v50 = vmax.f32 %v330_v48, %v403_v49 }
  0xda   : > { %v332_v51 = vpop.f32.mrf.mxu0  ;;  %v405_v52 = vpop.f32.mrf.mxu1 }
  0xdb   : > { %v442_v53 = vmax.f32 %v332_v51, %v405_v52 }
  0xdc   : > { %v334_v54 = vpop.f32.mrf.mxu0  ;;  %v407_v55 = vpop.f32.mrf.mxu1 }
  0xdd   : > { %v443_v56 = vmax.f32 %v334_v54, %v407_v55 }
  0xde   : > { %v338_v57 = vpop.f32.mrf.mxu0  ;;  %v411_v58 = vpop.f32.mrf.mxu1 }
  0xdf   : > { %v444_v59 = vmax.f32 %v338_v57, %v411_v58 }
  0xe0   : > { %v340_v60 = vpop.f32.mrf.mxu0  ;;  %v413_v61 = vpop.f32.mrf.mxu1 }
  0xe1   : > { %v445_v62 = vmax.f32 %v340_v60, %v413_v61 }
  0xe2   : > { %v342_v63 = vpop.f32.mrf.mxu0  ;;  %v415_v0 = vpop.f32.mrf.mxu1 }
  0xe3   : > { %v446_v1 = vmax.f32 %v342_v63, %v415_v0 }
  0xe4   : > { %v344_v2 = vpop.f32.mrf.mxu0  ;;  %v417_v3 = vpop.f32.mrf.mxu1 }
  0xe5   : > { %v447_v4 = vmax.f32 %v344_v2, %v417_v3 }
  0xe6   : > { %v348_v6 = vpop.f32.mrf.mxu0  ;;  %v421_v7 = vpop.f32.mrf.mxu1 }
  0xe7   : > { %v448_v8 = vmax.f32 %v348_v6, %v421_v7 }
  0xe8   : > { %v2934_v9 = vpop.f32.mrf.mxu0  ;;  %v423_v10 = vpop.f32.mrf.mxu1 }
  0xe9   : > { %v449_v11 = vmax.f32 %v2934_v9, %v423_v10 }
  0xea   : > { %v2937_v12 = vpop.f32.mrf.mxu0  ;;  %v2939_v13 = vpop.f32.mrf.mxu1 }
  0xeb   : > { %v450_v14 = vmax.f32 %v2937_v12, %v2939_v13 }
  0xec   : > { %v2943_v15 = vpop.f32.mrf.mxu0  ;;  %v2945_v16 = vpop.f32.mrf.mxu1 }
  0xed   : > { %v451_v17 = vmax.f32 %v2943_v15, %v2945_v16 }
  0xee   : > { %v2949_v19 = vpop.f32.mrf.mxu0  ;;  %v2951_v20 = vpop.f32.mrf.mxu1 }
  0xef   : > { %v452_v21 = vmax.f32 %v2949_v19, %v2951_v20 }
  0xf0   : > { %v2955_v22 = vpop.f32.mrf.mxu0  ;;  %v2957_v23 = vpop.f32.mrf.mxu1 }
  0xf1   : > { %v453_v24 = vmax.f32 %v2955_v22, %v2957_v23 }
  0xf2   : > { %v2961_v25 = vpop.f32.mrf.mxu0  ;;  %v2963_v26 = vpop.f32.mrf.mxu1 }
  0xf3   : > { %3687 = vst [vmem:[#allocation14_spill] sm:$0xff] %v2963_v26 }
  0xf4   : > { %v2967_v29 = vpop.f32.mrf.mxu0  ;;  %v2969_v31 = vpop.f32.mrf.mxu1 }
  0xf5   : > { %3688 = vst [vmem:[#allocation15_spill] sm:$0xff] %v2967_v29  ;;  %3689 = vst [vmem:[#allocation16_spill] sm:$0xff] %v2969_v31 }
  0xf6   : > { %v523_v33 = vpop.f32.mrf.mxu0  ;;  %v596_v34 = vpop.f32.mrf.mxu1 }
  0xf7   : > { %v635_v35 = vmax.f32 %v523_v33, %v596_v34 }
  0xf8   : > { %v525_v36 = vpop.f32.mrf.mxu0  ;;  %v598_v45 = vpop.f32.mrf.mxu1 }
  0xf9   : > { %v2973_v46 = vmax.f32 %v440_v47, %v635_v35  ;;  %v636_v48 = vmax.f32 %v525_v36, %v598_v45 }
  0xfa   : > { %v527_v49 = vpop.f32.mrf.mxu0  ;;  %v600_v51 = vpop.f32.mrf.mxu1 }
  0xfb   : > { %v2975_v52 = vmax.f32 %v441_v50, %v636_v48  ;;  %v637_v54 = vmax.f32 %v527_v49, %v600_v51 }
  0xfc   : > { %v529_v55 = vpop.f32.mrf.mxu0  ;;  %v602_v57 = vpop.f32.mrf.mxu1 }
  0xfd   : > { %v2977_v58 = vmax.f32 %v442_v53, %v637_v54  ;;  %v638_v60 = vmax.f32 %v529_v55, %v602_v57 }
  0xfe   : > { %v533_v61 = vpop.f32.mrf.mxu0  ;;  %v606_v63 = vpop.f32.mrf.mxu1 }
  0xff   : > { %v2979_v0 = vmax.f32 %v443_v56, %v638_v60  ;;  %v639_v2 = vmax.f32 %v533_v61, %v606_v63 }
 0x100   : > { %v535_v3 = vpop.f32.mrf.mxu0  ;;  %v608_v6 = vpop.f32.mrf.mxu1 }
 0x101   : > { %v2981_v47 = vmax.f32 %v444_v59, %v639_v2  ;;  %v640_v7 = vmax.f32 %v535_v3, %v608_v6 }
 0x102   : > { %v537_v9 = vpop.f32.mrf.mxu0  ;;  %v610_v10 = vpop.f32.mrf.mxu1 }
 0x103   : > { %v2983_v50 = vmax.f32 %v445_v62, %v640_v7  ;;  %v641_v12 = vmax.f32 %v537_v9, %v610_v10 }
 0x104   : > { %v539_v13 = vpop.f32.mrf.mxu0  ;;  %v612_v15 = vpop.f32.mrf.mxu1 }
 0x105   : > { %v2985_v53 = vmax.f32 %v446_v1, %v641_v12  ;;  %v642_v16 = vmax.f32 %v539_v13, %v612_v15 }
 0x106   : > { %v543_v33 = vpop.f32.mrf.mxu0  ;;  %v616_v34 = vpop.f32.mrf.mxu1 }
 0x107   : > { %v2987_v56 = vmax.f32 %v447_v4, %v642_v16  ;;  %v643_v35 = vmax.f32 %v543_v33, %v616_v34 }
 0x108   : > { %v545_v36 = vpop.f32.mrf.mxu0  ;;  %v618_v45 = vpop.f32.mrf.mxu1 }
 0x109   : > { %v2989_v59 = vmax.f32 %v448_v8, %v643_v35  ;;  %v644_v48 = vmax.f32 %v545_v36, %v618_v45 }
 0x10a   : > { %v547_v49 = vpop.f32.mrf.mxu0  ;;  %v620_v51 = vpop.f32.mrf.mxu1 }
 0x10b   : > { %v2991_v62 = vmax.f32 %v449_v11, %v644_v48  ;;  %v645_v54 = vmax.f32 %v547_v49, %v620_v51 }
 0x10c   : > { %v549_v55 = vpop.f32.mrf.mxu0  ;;  %v622_v57 = vpop.f32.mrf.mxu1 }
 0x10d   : > { %v2993_v1 = vmax.f32 %v450_v14, %v645_v54  ;;  %v646_v60 = vmax.f32 %v549_v55, %v622_v57 }
 0x10e   : > { %v553_v61 = vpop.f32.mrf.mxu0  ;;  %v626_v63 = vpop.f32.mrf.mxu1 }
 0x10f   : > { %v2995_v4 = vmax.f32 %v451_v17, %v646_v60  ;;  %v647_v2 = vmax.f32 %v553_v61, %v626_v63 }
 0x110   : > { %v555_v3 = vpop.f32.mrf.mxu0  ;;  %v628_v6 = vpop.f32.mrf.mxu1 }
 0x111   : > { %v3000_v8 = vmax.f32 %v452_v21, %v647_v2  ;;  %v648_v11 = vmax.f32 %v555_v3, %v628_v6 }
 0x112   : > { %v3002_v7 = vpop.f32.mrf.mxu0  ;;  %v3004_v9 = vpop.f32.mrf.mxu1 }
 0x113   : > { %v3009_v14 = vmax.f32 %v453_v24, %v648_v11 }
 0x114   : > { %v3011_v17 = vpop.f32.mrf.mxu0  ;;  %v3013_v10 = vpop.f32.mrf.mxu1 }
 0x115   : > { %3690 = vst [vmem:[#allocation17_spill] sm:$0xff] %v3009_v14 }
 0x116   : > { %v734_v12 = vpop.f32.mrf.mxu0  ;;  %v807_v13 = vpop.f32.mrf.mxu1 }
 0x117   : > { %v846_v43 = vmax.f32 %v734_v12, %v807_v13 }
 0x118   : > { %v736_v15 = vpop.f32.mrf.mxu0  ;;  %v809_v19 = vpop.f32.mrf.mxu1 }
 0x119   : > { %v847_v42 = vmax.f32 %v736_v15, %v809_v19  ;;  %v862_v40 = vmax.f32 %v2973_v46, %v846_v43 }
 0x11a   : > { %v738_v20 = vpop.f32.mrf.mxu0  ;;  %v811_v21 = vpop.f32.mrf.mxu1 }
 0x11b   : > { %v848_v38 = vmax.f32 %v738_v20, %v811_v21  ;;  %v863_v5 = vmax.f32 %v2975_v52, %v847_v42 }
 0x11c   : > { %v740_v16 = vpop.f32.mrf.mxu0  ;;  %v813_v33 = vpop.f32.mrf.mxu1 }
 0x11d   : > { %v849_v31 = vmax.f32 %v740_v16, %v813_v33 }
 0x11e   : > { %v744_v34 = vpop.f32.mrf.mxu0  ;;  %v817_v35 = vpop.f32.mrf.mxu1 }
 0x120   : > { %v746_v36 = vpop.f32.mrf.mxu0  ;;  %v819_v45 = vpop.f32.mrf.mxu1 }
 0x122   : > { %v748_v48 = vpop.f32.mrf.mxu0  ;;  %v821_v22 = vpop.f32.mrf.mxu1 }
 0x124   : > { %v3015_v23 = vpop.f32.mrf.mxu0  ;;  %v3017_v24 = vpop.f32.mrf.mxu1 }
 0x125   : > { %v853_v20 = vmax.f32 %v3015_v23, %v3017_v24 }
 0x126   : > { %v3019_v49 = vpop.f32.mrf.mxu0  ;;  %v3021_v51 = vpop.f32.mrf.mxu1 }
 0x128   : > { %v3023_v54 = vpop.f32.mrf.mxu0  ;;  %v3025_v55 = vpop.f32.mrf.mxu1 }
 0x12a   : > { %v3027_v57 = vpop.f32.mrf.mxu0  ;;  %v3029_v60 = vpop.f32.mrf.mxu1 }
 0x12c   : > { %v3031_v61 = vpop.f32.mrf.mxu0  ;;  %v3033_v63 = vpop.f32.mrf.mxu1 }
 0x12e   : > { %v3035_v2 = vpop.f32.mrf.mxu0  ;;  %v3037_v3 = vpop.f32.mrf.mxu1 }
 0x130   : > { %v3039_v6 = vpop.f32.mrf.mxu0  ;;  %v3041_v11 = vpop.f32.mrf.mxu1 }
 0x132   : > { %v3043_v32 = vpop.f32.mrf.mxu0  ;;  %v3045_v28 = vpop.f32.mrf.mxu1 }
 0x134   : > { %v3047_v44 = vpop.f32.mrf.mxu0  ;;  %v3049_v41 = vpop.f32.mrf.mxu1 }
 0x135   : > { %3691 = vst [vmem:[#allocation18_spill] sm:$0xff] %v3047_v44  ;;  %3692 = vst [vmem:[#allocation19_spill] sm:$0xff] %v3049_v41  ;;  %v864_v44 = vmax.f32 %v2977_v58, %v848_v38  ;;  %v850_v41 = vmax.f32 %v744_v34, %v817_v35  ;;  %v855_v35 = vmax.f32 %v3023_v54, %v3025_v55 }
 0x136   : > { %v945_v39 = vpop.f32.mrf.mxu0  ;;  %v1018_v37 = vpop.f32.mrf.mxu1 }
 0x137   : > { %v1057_v30 = vmax.f32 %v945_v39, %v1018_v37  ;;  %v865_v37 = vmax.f32 %v2979_v0, %v849_v31  ;;  %v851_v39 = vmax.f32 %v746_v36, %v819_v45 }
 0x138   : > { %v947_v27 = vpop.f32.mrf.mxu0  ;;  %v1020_v18 = vpop.f32.mrf.mxu1 }
 0x139   : > { %v3053_v29 = vmax.f32 %v862_v40, %v1057_v30   ;;  %v1058_v14 = vmax.f32 %v947_v27, %v1020_v18  ;;  %v866_v18 = vmax.f32 %v2981_v47, %v850_v41  ;;  %v852_v27 = vmax.f32 %v748_v48, %v821_v22 }
 0x13a   : > { %v949_v12 = vpop.f32.mrf.mxu0  ;;  %v1022_v13 = vpop.f32.mrf.mxu1  ;;  %v854_v41 = vmax.f32 %v3019_v49, %v3021_v51 }
 0x13b   : > { %v3056_v15 = vmax.f32 %v863_v5, %v1058_v14   ;;  %v1059_v19 = vmax.f32 %v949_v12, %v1022_v13  ;;  %v867_v14 = vmax.f32 %v2983_v50, %v851_v39  ;;  %v868_v21 = vmax.f32 %v2985_v53, %v852_v27 }
 0x13c   : > { %v951_v26 = vpop.f32.mrf.mxu0  ;;  %v1024_v43 = vpop.f32.mrf.mxu1  ;;  %v869_v50 = vmax.f32 %v2987_v56, %v853_v20  ;;  %v870_v23 = vmax.f32 %v2989_v59, %v854_v41  ;;  %v856_v53 = vmax.f32 %v3027_v57, %v3029_v60  ;;  %v871_v13 = vmax.f32 %v2991_v62, %v855_v35  ;;  %v3696_v20 = vld [vmem:[#allocation19_spill] sm:$0xff]  ;;  %v3699_v41 = vld [vmem:[#allocation16_spill] sm:$0xff] }
 0x13d   : > { %v3059_v46 = vmax.f32 %v864_v44, %v1059_v19   ;;  %v1060_v42 = vmax.f32 %v951_v26, %v1024_v43  ;;  %v857_v56 = vmax.f32 %v3031_v61, %v3033_v63  ;;  %v858_v59 = vmax.f32 %v3035_v2, %v3037_v3 }
 0x13e   : > { %v955_v52 = vpop.f32.mrf.mxu0  ;;  %v1028_v30 = vpop.f32.mrf.mxu1  ;;  %v649_v60 = vmax.f32 %v3002_v7, %v3004_v9  ;;  %v859_v61 = vmax.f32 %v3039_v6, %v3041_v11  ;;  %v860_v3 = vmax.f32 %v3043_v32, %v3045_v28  ;;  %v3695_v11 = vld [vmem:[#allocation17_spill] sm:$0xff] }
 0x13f   : > { %v3062_v40 = vmax.f32 %v865_v37, %v1060_v42   ;;  %v1061_v38 = vmax.f32 %v955_v52, %v1028_v30  ;;  %v872_v37 = vmax.f32 %v2993_v1, %v856_v53  ;;  %v873_v62 = vmax.f32 %v2995_v4, %v857_v56 }
 0x140   : > { %v957_v58 = vpop.f32.mrf.mxu0  ;;  %v1030_v5 = vpop.f32.mrf.mxu1  ;;  %v650_v1 = vmax.f32 %v3011_v17, %v3013_v10  ;;  %v874_v2 = vmax.f32 %v3000_v8, %v858_v59 }
 0x141   : > { %v3067_v31 = vmax.f32 %v866_v18, %v1061_v38   ;;  %v1062_v44 = vmax.f32 %v957_v58, %v1030_v5  ;;  %v3693_v38 = vld [vmem:[#allocation14_spill] sm:$0xff] }
 0x142   : > { %v959_v0 = vpop.f32.mrf.mxu0  ;;  %v1032_v26 = vpop.f32.mrf.mxu1  ;;  %v3694_v4 = vmax.f32 %v2961_v25, %v3693_v38 }
 0x143   : > { %v3072_v47 = vmax.f32 %v867_v14, %v1062_v44   ;;  %v1063_v16 = vmax.f32 %v959_v0, %v1032_v26  ;;  %v875_v14 = vmax.f32 %v3695_v11, %v859_v61  ;;  %v3697_v44 = vld [vmem:[#allocation18_spill] sm:$0xff] }
 0x144   : > { %v961_v33 = vpop.f32.mrf.mxu0  ;;  %v1034_v34 = vpop.f32.mrf.mxu1  ;;  %v665_v58 = vmax.f32 %v3694_v4, %v649_v60  ;;  %v861_v17 = vmax.f32 %v3697_v44, %v3696_v20 }
 0x145   : > { %v1079_v36 = vmax.f32 %v868_v21, %v1063_v16   ;;  %v1064_v45 = vmax.f32 %v961_v33, %v1034_v34  ;;  %v3698_v21 = vld [vmem:[#allocation15_spill] sm:$0xff] }
 0x146   : > { %v965_v48 = vpop.f32.mrf.mxu0  ;;  %v1038_v22 = vpop.f32.mrf.mxu1  ;;  %v3700_v28 = vmax.f32 %v3698_v21, %v3699_v41  ;;  %v876_v16 = vmax.f32 %v665_v58, %v860_v3 }
 0x147   : > { %v1080_v24 = vmax.f32 %v869_v50, %v1064_v45   ;;  %v1065_v49 = vmax.f32 %v965_v48, %v1038_v22 }
 0x148   : > { %v967_v51 = vpop.f32.mrf.mxu0  ;;  %v1040_v12 = vpop.f32.mrf.mxu1  ;;  %v666_v32 = vmax.f32 %v3700_v28, %v650_v1 }
 0x149   : > { %v1081_v19 = vmax.f32 %v870_v23, %v1065_v49   ;;  %v1066_v54 = vmax.f32 %v967_v51, %v1040_v12 }
 0x14a   : > { %v969_v55 = vpop.f32.mrf.mxu0  ;;  %v1042_v43 = vpop.f32.mrf.mxu1  ;;  %v877_v35 = vmax.f32 %v666_v32, %v861_v17 }
 0x14b   : > { %v1082_v39 = vmax.f32 %v871_v13, %v1066_v54   ;;  %v1067_v57 = vmax.f32 %v969_v55, %v1042_v43 }
 0x14c   : > { %v971_v42 = vpop.f32.mrf.mxu0  ;;  %v1044_v52 = vpop.f32.mrf.mxu1 }
 0x14d   : > { %v1083_v63 = vmax.f32 %v872_v37, %v1067_v57   ;;  %v1068_v30 = vmax.f32 %v971_v42, %v1044_v52 }
 0x14e   : > { %v975_v18 = vpop.f32.mrf.mxu0  ;;  %v1048_v27 = vpop.f32.mrf.mxu1 }
 0x14f   : > { %v1084_v7 = vmax.f32 %v873_v62, %v1068_v30   ;;  %v1069_v9 = vmax.f32 %v975_v18, %v1048_v27 }
 0x150   : > { %v977_v5 = vpop.f32.mrf.mxu0  ;;  %v1050_v6 = vpop.f32.mrf.mxu1 }
 0x151   : > { %v1085_v10 = vmax.f32 %v874_v2, %v1069_v9   ;;  %v1070_v0 = vmax.f32 %v977_v5, %v1050_v6 }
 0x152   : > { %v979_v26 = vpop.f32.mrf.mxu0  ;;  %v1052_v8 = vpop.f32.mrf.mxu1 }
 0x153   : > { %v1086_v33 = vmax.f32 %v875_v14, %v1070_v0   ;;  %v1071_v34 = vmax.f32 %v979_v26, %v1052_v8 }
 0x154   : > { %v981_v25 = vpop.f32.mrf.mxu0  ;;  %v1054_v50 = vpop.f32.mrf.mxu1 }
 0x155   : > { %v1087_v45 = vmax.f32 %v876_v16, %v1071_v34   ;;  %v1072_v48 = vmax.f32 %v981_v25, %v1054_v50 }
 0x157   : > { %v1088_v22 = vmax.f32 %v877_v35, %v1072_v48  }
 0x158 LB: >> { %3701 = vst [vmem:[#allocation20_spill] sm:$0xff] %v2638_v22  ;;  %v2705_v23 = vmov 0   ;;  %s2348_s23 = sshll.u32 %s2702_s22, 7  ;;  %v3702_v60 = vld [vmem:[#allocation2_spill] sm:$0xff]  ;;  %v3703_v62 = vld [vmem:[#allocation3_spill] sm:$0xff]  ;;  %v3704_v61 = vld [vmem:[#allocation4_spill] sm:$0xff]  ;;  %s2702_s22 = sphi %s3143_s22, %s1094_s22   ;;  %v2698_v29 = vphi %v3053_v29, %v3750_v29   ;;  %v2694_v15 = vphi %v3056_v15, %v3749_v15   ;;  %v2690_v46 = vphi %v3059_v46, %v3748_v46   ;;  %v2686_v40 = vphi %v3062_v40, %v3747_v40   ;;  %v2682_v31 = vphi %v3067_v31, %v3746_v31   ;;  %v2678_v47 = vphi %v3072_v47, %v3745_v47   ;;  %v2674_v36 = vphi %v1079_v36, %v3744_v36   ;;  %v2670_v24 = vphi %v1080_v24, %v3743_v24   ;;  %v2666_v19 = vphi %v1081_v19, %v3742_v19   ;;  %v2662_v39 = vphi %v1082_v39, %v3741_v39   ;;  %v2658_v63 = vphi %v1083_v63, %v3740_v63   ;;  %v2654_v7 = vphi %v1084_v7, %v3739_v7   ;;  %v2650_v10 = vphi %v1085_v10, %v3738_v10   ;;  %v2646_v33 = vphi %v1086_v33, %v3737_v33   ;;  %v2642_v45 = vphi %v1087_v45, %v3736_v45   ;;  %v2638_v22 = vphi %v1088_v22, %v3735_v22  }
 0x159   : >> { %1179 = vmatprep.mubr.bf16.mxu0 %v2705_v23  ;;  %1252 = vmatprep.mubr.bf16.mxu1 %v2705_v23  ;;  %s3200_s24 = scalar_lea.vmem %s2741_s18, %s2348_s23  ;;  %v3705_v30 = vld [vmem:[#allocation5_spill] sm:$0xff]  ;;  %s1094_s22 = sadd.s32 1, %s2702_s22  }
 0x15a   : >> { %v2536_v53 = vld [vmem:[%s3200_s24 + $0x4] ss:$16 sps:$4 sm:$0x1f]   ;;  %v2538_v49 = vld [vmem:[%s3200_s24 + $0xc] ss:$16 sps:$4 sm:$0x1f]  }
 0x15b   : >> { %2265 = vmatprep.subr.msk.bf16.mxu0 %vm281_vm0, %v2536_v53  ;;  %v2540_v51 = vld [vmem:[%s3200_s24] ss:$16 sps:$4 sm:$0x1f]   ;;  %v2541_v12 = vld [vmem:[%s3200_s24 + $0x8] ss:$16 sps:$4 sm:$0x1f]   ;;  %2270 = vmatprep.subr.msk.bf16.mxu1 %vm281_vm0, %v2538_v49 }
 0x15c   : >> { %v2542_v13 = vld [vmem:[%s3200_s24 + $0x24] ss:$16 sps:$4 sm:$0x1f]   ;;  %v1136_v56 = vsel %vm281_vm0, %v2540_v51, 0  ;;  %v1142_v54 = vsel %vm281_vm0, %v2541_v12, 0  ;;  %p3555_p4 = scmp.ge.s32.totalorder %s1094_s22, 4  }
 0x15d   : >> { %1162 = vmatpush1.bf16.msra.mxu0 %v1136_v56  ;;  %1235 = vmatpush1.bf16.msra.mxu1 %v1142_v54  ;;  %v2544_v55 = vld [vmem:[%s3200_s24 + $0x2c] ss:$16 sps:$4 sm:$0x1f]   ;;  %v2546_v43 = vld [vmem:[%s3200_s24 + $0x20] ss:$16 sps:$4 sm:$0x1f]  }
 0x15e   : >> { %2285 = vmatprep.subr.msk.bf16.mxu0 %vm281_vm0, %v2542_v13  ;;  %v2547_v37 = vld [vmem:[%s3200_s24 + $0x28] ss:$16 sps:$4 sm:$0x1f]   ;;  %2290 = vmatprep.subr.msk.bf16.mxu1 %vm281_vm0, %v2544_v55  ;;  %v1350_v59 = vsel %vm281_vm0, %v2546_v43, 0 }
 0x15f   : >> { %v2548_v57 = vld [vmem:[%s3200_s24 + $0x44] ss:$16 sps:$4 sm:$0x1f]   ;;  %v1356_v42 = vsel %vm281_vm0, %v2547_v37, 0 }
 0x160   : >> { %2266 = vmatmul.mubr.msk.bf16.vlgmr.msra.gmra.mxu0 %vm268_vm1, %v3702_v60  ;;  %2271 = vmatmul.mubr.msk.bf16.vlgmr.msra.gmra.mxu1 %vm268_vm1, %v3702_v60  ;;  %v2550_v52 = vld [vmem:[%s3200_s24 + $0x4c] ss:$16 sps:$4 sm:$0x1f]   ;;  %v2552_v1 = vld [vmem:[%s3200_s24 + $0x40] ss:$16 sps:$4 sm:$0x1f]  }
 0x161   : >> { %1376 = vmatpush1.bf16.msra.mxu0 %v1350_v59  ;;  %1449 = vmatpush1.bf16.msra.mxu1 %v1356_v42  ;;  %v2553_v18 = vld [vmem:[%s3200_s24 + $0x48] ss:$16 sps:$4 sm:$0x1f]   ;;  %v1564_v27 = vsel %vm281_vm0, %v2552_v1, 0 }
 0x162   : >> { %1189 = vmatprep.mubr.bf16.mxu0 %v2705_v23  ;;  %1262 = vmatprep.mubr.bf16.mxu1 %v2705_v23  ;;  %v1570_v2 = vsel %vm281_vm0, %v2553_v18, 0  ;;  %v2554_v3 = vld [vmem:[%s3200_s24 + $0x64] ss:$16 sps:$4 sm:$0x1f]  }
 0x163   : >> { %2305 = vmatprep.subr.msk.bf16.mxu0 %vm281_vm0, %v2548_v57  ;;  %2310 = vmatprep.subr.msk.bf16.mxu1 %vm281_vm0, %v2550_v52  ;;  %v2556_v9 = vld [vmem:[%s3200_s24 + $0x6c] ss:$16 sps:$4 sm:$0x1f]   ;;  %v2558_v38 = vld [vmem:[%s3200_s24 + $0x60] ss:$16 sps:$4 sm:$0x1f]  }
 0x164   : >> { %v2559_v4 = vld [vmem:[%s3200_s24 + $0x68] ss:$16 sps:$4 sm:$0x1f]   ;;  %v1778_v58 = vsel %vm281_vm0, %v2558_v38, 0 }
 0x165   : >> { %v1784_v5 = vsel %vm281_vm0, %v2559_v4, 0 }
 0x168   : >> { %2267 = vmatmul.mubr.msk.bf16.gmra.mxu0 %vm268_vm1, %v3703_v62  ;;  %2272 = vmatmul.mubr.msk.bf16.gmra.mxu1 %vm268_vm1, %v3703_v62 }
 0x169   : >> { %1199 = vmatprep.mubr.bf16.mxu0 %v2705_v23  ;;  %1272 = vmatprep.mubr.bf16.mxu1 %v2705_v23 }
 0x170   : >> { %2268 = vmatmul.mubr.msk.bf16.gmra.mxu0 %vm268_vm1, %v3704_v61  ;;  %2273 = vmatmul.mubr.msk.bf16.gmra.mxu1 %vm268_vm1, %v3704_v61 }
 0x171   : >> { %1209 = vmatprep.mubr.bf16.mxu0 %v2705_v23  ;;  %1282 = vmatprep.mubr.bf16.mxu1 %v2705_v23 }
 0x178   : >> { %2269 = vmatmul.mubr.msk.bf16.gmra.mxu0 %vm268_vm1, %v3705_v30  ;;  %2274 = vmatmul.mubr.msk.bf16.gmra.mxu1 %vm268_vm1, %v3705_v30 }
 0x179   : >> { %1393 = vmatprep.mubr.bf16.mxu0 %v2705_v23  ;;  %1466 = vmatprep.mubr.bf16.mxu1 %v2705_v23 }
 0x180   : >> { %2286 = vmatmul.mubr.msk.bf16.vlgmr.msra.gmra.mxu0 %vm268_vm1, %v3702_v60  ;;  %2291 = vmatmul.mubr.msk.bf16.vlgmr.msra.gmra.mxu1 %vm268_vm1, %v3702_v60 }
 0x181   : >> { %1590 = vmatpush1.bf16.msra.mxu0 %v1564_v27  ;;  %1663 = vmatpush1.bf16.msra.mxu1 %v1570_v2 }
 0x182   : >> { %1403 = vmatprep.mubr.bf16.mxu0 %v2705_v23  ;;  %1476 = vmatprep.mubr.bf16.mxu1 %v2705_v23 }
 0x183   : >> { %2325 = vmatprep.subr.msk.bf16.mxu0 %vm281_vm0, %v2554_v3  ;;  %2330 = vmatprep.subr.msk.bf16.mxu1 %vm281_vm0, %v2556_v9 }
 0x188   : >> { %2287 = vmatmul.mubr.msk.bf16.gmra.mxu0 %vm268_vm1, %v3703_v62  ;;  %2292 = vmatmul.mubr.msk.bf16.gmra.mxu1 %vm268_vm1, %v3703_v62 }
 0x189   : >> { %1413 = vmatprep.mubr.bf16.mxu0 %v2705_v23  ;;  %1486 = vmatprep.mubr.bf16.mxu1 %v2705_v23 }
 0x190   : >> { %2288 = vmatmul.mubr.msk.bf16.gmra.mxu0 %vm268_vm1, %v3704_v61  ;;  %2293 = vmatmul.mubr.msk.bf16.gmra.mxu1 %vm268_vm1, %v3704_v61 }
 0x191   : >> { %1423 = vmatprep.mubr.bf16.mxu0 %v2705_v23  ;;  %1496 = vmatprep.mubr.bf16.mxu1 %v2705_v23 }
 0x198   : >> { %2289 = vmatmul.mubr.msk.bf16.gmra.mxu0 %vm268_vm1, %v3705_v30  ;;  %2294 = vmatmul.mubr.msk.bf16.gmra.mxu1 %vm268_vm1, %v3705_v30 }
 0x199   : >> { %1607 = vmatprep.mubr.bf16.mxu0 %v2705_v23  ;;  %1680 = vmatprep.mubr.bf16.mxu1 %v2705_v23 }
 0x1a0   : >> { %2306 = vmatmul.mubr.msk.bf16.vlgmr.msra.gmra.mxu0 %vm268_vm1, %v3702_v60  ;;  %2311 = vmatmul.mubr.msk.bf16.vlgmr.msra.gmra.mxu1 %vm268_vm1, %v3702_v60 }
 0x1a1   : >> { %1804 = vmatpush1.bf16.msra.mxu0 %v1778_v58  ;;  %1877 = vmatpush1.bf16.msra.mxu1 %v1784_v5 }
 0x1a2   : >> { %1617 = vmatprep.mubr.bf16.mxu0 %v2705_v23  ;;  %1690 = vmatprep.mubr.bf16.mxu1 %v2705_v23 }
 0x1a8   : >> { %2307 = vmatmul.mubr.msk.bf16.gmra.mxu0 %vm268_vm1, %v3703_v62  ;;  %2312 = vmatmul.mubr.msk.bf16.gmra.mxu1 %vm268_vm1, %v3703_v62 }
 0x1a9   : >> { %1627 = vmatprep.mubr.bf16.mxu0 %v2705_v23  ;;  %1700 = vmatprep.mubr.bf16.mxu1 %v2705_v23 }
 0x1b0   : >> { %2308 = vmatmul.mubr.msk.bf16.gmra.mxu0 %vm268_vm1, %v3704_v61  ;;  %2313 = vmatmul.mubr.msk.bf16.gmra.mxu1 %vm268_vm1, %v3704_v61 }
 0x1b1   : >> { %1637 = vmatprep.mubr.bf16.mxu0 %v2705_v23  ;;  %1710 = vmatprep.mubr.bf16.mxu1 %v2705_v23 }
 0x1b8   : >> { %2309 = vmatmul.mubr.msk.bf16.gmra.mxu0 %vm268_vm1, %v3705_v30  ;;  %2314 = vmatmul.mubr.msk.bf16.gmra.mxu1 %vm268_vm1, %v3705_v30 }
 0x1b9   : >> { %1821 = vmatprep.mubr.bf16.mxu0 %v2705_v23  ;;  %1894 = vmatprep.mubr.bf16.mxu1 %v2705_v23 }
 0x1c0   : >> { %2326 = vmatmul.mubr.msk.bf16.vlgmr.msra.gmra.mxu0 %vm268_vm1, %v3702_v60  ;;  %2331 = vmatmul.mubr.msk.bf16.vlgmr.msra.gmra.mxu1 %vm268_vm1, %v3702_v60 }
 0x1c1   : >> { %1831 = vmatprep.mubr.bf16.mxu0 %v2705_v23  ;;  %1904 = vmatprep.mubr.bf16.mxu1 %v2705_v23 }
 0x1c8   : >> { %2327 = vmatmul.mubr.msk.bf16.gmra.mxu0 %vm268_vm1, %v3703_v62  ;;  %2332 = vmatmul.mubr.msk.bf16.gmra.mxu1 %vm268_vm1, %v3703_v62 }
 0x1c9   : >> { %1841 = vmatprep.mubr.bf16.mxu0 %v2705_v23  ;;  %1914 = vmatprep.mubr.bf16.mxu1 %v2705_v23 }
 0x1d0   : >> { %2328 = vmatmul.mubr.msk.bf16.gmra.mxu0 %vm268_vm1, %v3704_v61  ;;  %2333 = vmatmul.mubr.msk.bf16.gmra.mxu1 %vm268_vm1, %v3704_v61 }
 0x1d1   : >> { %1851 = vmatprep.mubr.bf16.mxu0 %v2705_v23  ;;  %1924 = vmatprep.mubr.bf16.mxu1 %v2705_v23 }
 0x1d8   : >> { %2329 = vmatmul.mubr.msk.bf16.gmra.mxu0 %vm268_vm1, %v3705_v30  ;;  %2334 = vmatmul.mubr.msk.bf16.gmra.mxu1 %vm268_vm1, %v3705_v30 }
 0x220   : >> { %v1181_v6 = vpop.f32.mrf.mxu0  ;;  %v1254_v11 = vpop.f32.mrf.mxu1 }
 0x221   : >> { %v1293_v14 = vmax.f32 %v1181_v6, %v1254_v11 }
 0x222   : >> { %v1183_v20 = vpop.f32.mrf.mxu0  ;;  %v1256_v44 = vpop.f32.mrf.mxu1 }
 0x223   : >> { %v1294_v17 = vmax.f32 %v1183_v20, %v1256_v44 }
 0x224   : >> { %v1185_v0 = vpop.f32.mrf.mxu0  ;;  %v1258_v26 = vpop.f32.mrf.mxu1 }
 0x225   : >> { %v1295_v8 = vmax.f32 %v1185_v0, %v1258_v26 }
 0x226   : >> { %v1187_v21 = vpop.f32.mrf.mxu0  ;;  %v1260_v41 = vpop.f32.mrf.mxu1 }
 0x227   : >> { %v1296_v28 = vmax.f32 %v1187_v21, %v1260_v41  ;;  %v1309_v21 = vmax.f32 %v2698_v29, %v1293_v14 }
 0x228   : >> { %v1191_v32 = vpop.f32.mrf.mxu0  ;;  %v1264_v16 = vpop.f32.mrf.mxu1 }
 0x229   : >> { %v1297_v34 = vmax.f32 %v1191_v32, %v1264_v16  ;;  %v1312_v18 = vmax.f32 %v2686_v40, %v1296_v28 }
 0x22a   : >> { %v1193_v25 = vpop.f32.mrf.mxu0  ;;  %v1266_v50 = vpop.f32.mrf.mxu1 }
 0x22b   : >> { %v1298_v35 = vmax.f32 %v1193_v25, %v1266_v50  ;;  %v1310_v25 = vmax.f32 %v2694_v15, %v1294_v17  ;;  %v1313_v15 = vmax.f32 %v2682_v31, %v1297_v34 }
 0x22c   : >> { %v1195_v48 = vpop.f32.mrf.mxu0  ;;  %v1268_v23 = vpop.f32.mrf.mxu1 }
 0x22d   : >> { %v1299_v53 = vmax.f32 %v1195_v48, %v1268_v23 }
 0x22e   : >> { %v3328_v49 = vpop.f32.mrf.mxu0  ;;  %v3330_v51 = vpop.f32.mrf.mxu1 }
 0x22f   : >> { %v1300_v12 = vmax.f32 %v3328_v49, %v3330_v51  ;;  %v1311_v51 = vmax.f32 %v2690_v46, %v1295_v8  ;;  %v1314_v46 = vmax.f32 %v2678_v47, %v1298_v35  ;;  %v1315_v40 = vmax.f32 %v2674_v36, %v1299_v53 }
 0x230   : >> { %v3334_v13 = vpop.f32.mrf.mxu0  ;;  %v3336_v56 = vpop.f32.mrf.mxu1 }
 0x231   : >> { %v1301_v54 = vmax.f32 %v3334_v13, %v3336_v56  ;;  %v1316_v31 = vmax.f32 %v2670_v24, %v1300_v12 }
 0x232   : >> { %v3340_v55 = vpop.f32.mrf.mxu0  ;;  %v3342_v43 = vpop.f32.mrf.mxu1 }
 0x233   : >> { %v1302_v37 = vmax.f32 %v3340_v55, %v3342_v43  ;;  %v1317_v47 = vmax.f32 %v2666_v19, %v1301_v54 }
 0x234   : >> { %v3346_v59 = vpop.f32.mrf.mxu0  ;;  %v3348_v57 = vpop.f32.mrf.mxu1 }
 0x235   : >> { %v1303_v42 = vmax.f32 %v3346_v59, %v3348_v57  ;;  %v1318_v24 = vmax.f32 %v2662_v39, %v1302_v37 }
 0x236   : >> { %v3352_v52 = vpop.f32.mrf.mxu0  ;;  %v3354_v1 = vpop.f32.mrf.mxu1 }
 0x237   : >> { %v1319_v19 = vmax.f32 %v2658_v63, %v1303_v42  ;;  %v3708_v55 = vmax.f32 %v3352_v52, %v3354_v1 }
 0x238   : >> { %v3358_v27 = vpop.f32.mrf.mxu0  ;;  %v3360_v2 = vpop.f32.mrf.mxu1 }
 0x239   : >> { %v1320_v39 = vmax.f32 %v2654_v7, %v3708_v55  ;;  %v3709_v59 = vmax.f32 %v3358_v27, %v3360_v2 }
 0x23a   : >> { %v3364_v9 = vpop.f32.mrf.mxu0  ;;  %v3366_v38 = vpop.f32.mrf.mxu1 }
 0x23b   : >> { %v1321_v63 = vmax.f32 %v2650_v10, %v3709_v59  ;;  %v3710_v52 = vmax.f32 %v3364_v9, %v3366_v38 }
 0x23c   : >> { %v3370_v58 = vpop.f32.mrf.mxu0  ;;  %v3372_v5 = vpop.f32.mrf.mxu1 }
 0x23d   : >> { %v1322_v7 = vmax.f32 %v2646_v33, %v3710_v52 }
 0x23e   : >> { %v3376_v11 = vpop.f32.mrf.mxu0  ;;  %v3378_v20 = vpop.f32.mrf.mxu1 }
 0x23f   : >> { %3706 = vst [vmem:[#allocation21_spill] sm:$0xff] %v3376_v11  ;;  %3707 = vst [vmem:[#allocation22_spill] sm:$0xff] %v3378_v20 }
 0x240   : >> { %v1395_v0 = vpop.f32.mrf.mxu0  ;;  %v1468_v26 = vpop.f32.mrf.mxu1 }
 0x241   : >> { %v1507_v41 = vmax.f32 %v1395_v0, %v1468_v26 }
 0x242   : >> { %v1397_v32 = vpop.f32.mrf.mxu0  ;;  %v1470_v16 = vpop.f32.mrf.mxu1 }
 0x243   : >> { %v3384_v50 = vmax.f32 %v1309_v21, %v1507_v41  ;;  %v1508_v48 = vmax.f32 %v1397_v32, %v1470_v16 }
 0x244   : >> { %v1399_v23 = vpop.f32.mrf.mxu0  ;;  %v1472_v49 = vpop.f32.mrf.mxu1 }
 0x245   : >> { %v3387_v6 = vmax.f32 %v1310_v25, %v1508_v48  ;;  %v1509_v4 = vmax.f32 %v1399_v23, %v1472_v49 }
 0x246   : >> { %v1401_v44 = vpop.f32.mrf.mxu0  ;;  %v1474_v3 = vpop.f32.mrf.mxu1 }
 0x247   : >> { %v3390_v29 = vmax.f32 %v1311_v51, %v1509_v4  ;;  %v1510_v14 = vmax.f32 %v1401_v44, %v1474_v3 }
 0x248   : >> { %v1405_v0 = vpop.f32.mrf.mxu0  ;;  %v1478_v26 = vpop.f32.mrf.mxu1 }
 0x249   : >> { %v3393_v17 = vmax.f32 %v1312_v18, %v1510_v14  ;;  %v1511_v21 = vmax.f32 %v1405_v0, %v1478_v26 }
 0x24a   : >> { %v1407_v41 = vpop.f32.mrf.mxu0  ;;  %v1480_v32 = vpop.f32.mrf.mxu1 }
 0x24b   : >> { %v3396_v8 = vmax.f32 %v1313_v15, %v1511_v21  ;;  %v1512_v16 = vmax.f32 %v1407_v41, %v1480_v32 }
 0x24c   : >> { %v1409_v25 = vpop.f32.mrf.mxu0  ;;  %v1482_v48 = vpop.f32.mrf.mxu1 }
 0x24d   : >> { %v3399_v28 = vmax.f32 %v1314_v46, %v1512_v16  ;;  %v1513_v3 = vmax.f32 %v1409_v25, %v1482_v48 }
 0x24e   : >> { %v1411_v4 = vpop.f32.mrf.mxu0  ;;  %v1484_v44 = vpop.f32.mrf.mxu1 }
 0x24f   : >> { %v3402_v34 = vmax.f32 %v1315_v40, %v1513_v3  ;;  %v1514_v18 = vmax.f32 %v1411_v4, %v1484_v44 }
 0x250   : >> { %v1415_v23 = vpop.f32.mrf.mxu0  ;;  %v1488_v49 = vpop.f32.mrf.mxu1 }
 0x251   : >> { %v3408_v35 = vmax.f32 %v1316_v31, %v1514_v18  ;;  %v1515_v36 = vmax.f32 %v1415_v23, %v1488_v49 }
 0x252   : >> { %v1417_v53 = vpop.f32.mrf.mxu0  ;;  %v1490_v51 = vpop.f32.mrf.mxu1 }
 0x253   : >> { %v3414_v12 = vmax.f32 %v1317_v47, %v1515_v36  ;;  %v1516_v14 = vmax.f32 %v1417_v53, %v1490_v51 }
 0x254   : >> { %v1419_v0 = vpop.f32.mrf.mxu0  ;;  %v1492_v26 = vpop.f32.mrf.mxu1 }
 0x255   : >> { %v3420_v13 = vmax.f32 %v1318_v24, %v1516_v14  ;;  %v1517_v56 = vmax.f32 %v1419_v0, %v1492_v26 }
 0x256   : >> { %v1421_v54 = vpop.f32.mrf.mxu0  ;;  %v1494_v15 = vpop.f32.mrf.mxu1 }
 0x257   : >> { %v3426_v43 = vmax.f32 %v1319_v19, %v1517_v56  ;;  %v1518_v37 = vmax.f32 %v1421_v54, %v1494_v15 }
 0x258   : >> { %v1425_v21 = vpop.f32.mrf.mxu0  ;;  %v1498_v41 = vpop.f32.mrf.mxu1 }
 0x259   : >> { %v3432_v57 = vmax.f32 %v1320_v39, %v1518_v37  ;;  %v1519_v42 = vmax.f32 %v1425_v21, %v1498_v41 }
 0x25a   : >> { %v1427_v32 = vpop.f32.mrf.mxu0  ;;  %v1500_v46 = vpop.f32.mrf.mxu1 }
 0x25b   : >> { %v3438_v1 = vmax.f32 %v1321_v63, %v1519_v42  ;;  %v1520_v16 = vmax.f32 %v1427_v32, %v1500_v46 }
 0x25c   : >> { %v3440_v25 = vpop.f32.mrf.mxu0  ;;  %v3442_v48 = vpop.f32.mrf.mxu1 }
 0x25d   : >> { %v3444_v27 = vmax.f32 %v1322_v7, %v1520_v16 }
 0x25e   : >> { %v3446_v10 = vpop.f32.mrf.mxu0  ;;  %v3448_v2 = vpop.f32.mrf.mxu1 }
 0x25f   : >> { %3711 = vst [vmem:[#allocation23_spill] sm:$0xff] %v3444_v27 }
 0x260   : >> { %v1609_v40 = vpop.f32.mrf.mxu0  ;;  %v1682_v3 = vpop.f32.mrf.mxu1 }
 0x261   : >> { %v1721_v42 = vmax.f32 %v1609_v40, %v1682_v3 }
 0x262   : >> { %v1611_v4 = vpop.f32.mrf.mxu0  ;;  %v1684_v44 = vpop.f32.mrf.mxu1 }
 0x263   : >> { %v1722_v52 = vmax.f32 %v1611_v4, %v1684_v44  ;;  %v1737_v30 = vmax.f32 %v3384_v50, %v1721_v42 }
 0x264   : >> { %v1613_v9 = vpop.f32.mrf.mxu0  ;;  %v1686_v38 = vpop.f32.mrf.mxu1 }
 0x265   : >> { %v1723_v60 = vmax.f32 %v1613_v9, %v1686_v38  ;;  %v1738_v22 = vmax.f32 %v3387_v6, %v1722_v52 }
 0x266   : >> { %v1615_v33 = vpop.f32.mrf.mxu0  ;;  %v1688_v31 = vpop.f32.mrf.mxu1 }
 0x267   : >> { %v1724_v20 = vmax.f32 %v1615_v33, %v1688_v31 }
 0x268   : >> { %v1619_v18 = vpop.f32.mrf.mxu0  ;;  %v1692_v23 = vpop.f32.mrf.mxu1 }
 0x269   : >> { %v1740_v9 = vmax.f32 %v3393_v17, %v1724_v20 }
 0x26a   : >> { %v1621_v49 = vpop.f32.mrf.mxu0  ;;  %v1694_v47 = vpop.f32.mrf.mxu1 }
 0x26b   : >> { %v1726_v38 = vmax.f32 %v1621_v49, %v1694_v47 }
 0x26c   : >> { %v1623_v36 = vpop.f32.mrf.mxu0  ;;  %v1696_v53 = vpop.f32.mrf.mxu1 }
 0x26d   : >> { %v1742_v31 = vmax.f32 %v3399_v28, %v1726_v38 }
 0x26e   : >> { %v3450_v51 = vpop.f32.mrf.mxu0  ;;  %v3452_v24 = vpop.f32.mrf.mxu1 }
 0x270   : >> { %v3454_v14 = vpop.f32.mrf.mxu0  ;;  %v3456_v0 = vpop.f32.mrf.mxu1 }
 0x272   : >> { %v3458_v26 = vpop.f32.mrf.mxu0  ;;  %v3460_v19 = vpop.f32.mrf.mxu1 }
 0x274   : >> { %v3462_v56 = vpop.f32.mrf.mxu0  ;;  %v3464_v54 = vpop.f32.mrf.mxu1 }
 0x276   : >> { %v3466_v15 = vpop.f32.mrf.mxu0  ;;  %v3468_v55 = vpop.f32.mrf.mxu1 }
 0x278   : >> { %v3470_v39 = vpop.f32.mrf.mxu0  ;;  %v3472_v37 = vpop.f32.mrf.mxu1 }
 0x27a   : >> { %v3474_v21 = vpop.f32.mrf.mxu0  ;;  %v3476_v41 = vpop.f32.mrf.mxu1 }
 0x27c   : >> { %v3478_v59 = vpop.f32.mrf.mxu0  ;;  %v3480_v63 = vpop.f32.mrf.mxu1 }
 0x27d   : >> { %3712 = vst [vmem:[#allocation24_spill] sm:$0xff] %v3478_v59  ;;  %3713 = vst [vmem:[#allocation25_spill] sm:$0xff] %v3480_v63 }
 0x27e   : >> { %v3482_v32 = vpop.f32.mrf.mxu0  ;;  %v3484_v46 = vpop.f32.mrf.mxu1 }
 0x27f   : >> { %3714 = vst [vmem:[#allocation26_spill] sm:$0xff] %v3482_v32  ;;  %3715 = vst [vmem:[#allocation27_spill] sm:$0xff] %v3484_v46  ;;  %v1739_v32 = vmax.f32 %v3390_v29, %v1723_v60  ;;  %v1725_v46 = vmax.f32 %v1619_v18, %v1692_v23  ;;  %v1728_v18 = vmax.f32 %v3450_v51, %v3452_v24 }
 0x280   : >> { %v1823_v7 = vpop.f32.mrf.mxu0  ;;  %v1896_v16 = vpop.f32.mrf.mxu1  ;;  %v1730_v51 = vmax.f32 %v3458_v26, %v3460_v19  ;;  %v1732_v26 = vmax.f32 %v3466_v15, %v3468_v55 }
 0x281   : >> { %v1935_v61 = vmax.f32 %v1823_v7, %v1896_v16  ;;  %v1744_v28 = vmax.f32 %v3408_v35, %v1728_v18 }
 0x282   : >> { %v1825_v62 = vpop.f32.mrf.mxu0  ;;  %v1898_v27 = vpop.f32.mrf.mxu1  ;;  %v1746_v35 = vmax.f32 %v3420_v13, %v1730_v51  ;;  %v1748_v15 = vmax.f32 %v3432_v57, %v1732_v26 }
 0x283   : >> { %v3488_v11 = vmax.f32 %v1737_v30, %v1935_v61   ;;  %v1936_v59 = vmax.f32 %v1825_v62, %v1898_v27  ;;  %v1741_v62 = vmax.f32 %v3396_v8, %v1725_v46  ;;  %v1727_v30 = vmax.f32 %v1623_v36, %v1696_v53 }
 0x284   : >> { %v1827_v40 = vpop.f32.mrf.mxu0  ;;  %v1900_v3 = vpop.f32.mrf.mxu1  ;;  %v1729_v8 = vmax.f32 %v3454_v14, %v3456_v0  ;;  %v1731_v14 = vmax.f32 %v3462_v56, %v3464_v54  ;;  %v1733_v56 = vmax.f32 %v3470_v39, %v3472_v37  ;;  %v3725_v57 = vld [vmem:[#allocation24_spill] sm:$0xff] }
 0x285   : >> { %v3491_v4 = vmax.f32 %v1738_v22, %v1936_v59   ;;  %v1937_v44 = vmax.f32 %v1827_v40, %v1900_v3  ;;  %v1743_v47 = vmax.f32 %v3402_v34, %v1727_v30 }
 0x286   : >> { %v1829_v63 = vpop.f32.mrf.mxu0  ;;  %v1902_v50 = vpop.f32.mrf.mxu1  ;;  %v1745_v34 = vmax.f32 %v3414_v12, %v1729_v8  ;;  %v1747_v12 = vmax.f32 %v3426_v43, %v1731_v14  ;;  %v3723_v43 = vmax.f32 %v3370_v58, %v3372_v5 }
 0x287   : >> { %v3494_v42 = vmax.f32 %v1739_v32, %v1937_v44   ;;  %v1938_v6 = vmax.f32 %v1829_v63, %v1902_v50 }
 0x288   : >> { %v1833_v33 = vpop.f32.mrf.mxu0  ;;  %v1906_v61 = vpop.f32.mrf.mxu1  ;;  %v1323_v37 = vmax.f32 %v2642_v45, %v3723_v43 }
 0x289   : >> { %v3497_v40 = vmax.f32 %v1740_v9, %v1938_v6   ;;  %v1939_v60 = vmax.f32 %v1833_v33, %v1906_v61  ;;  %v1521_v33 = vmax.f32 %v3440_v25, %v3442_v48  ;;  %v1749_v48 = vmax.f32 %v3438_v1, %v1733_v56  ;;  %v3753_v56 = vld [vmem:[#allocation6_spill] sm:$0xff] (%p3555_p4) }
 0x28a   : >> { %v1835_v29 = vpop.f32.mrf.mxu0  ;;  %v1908_v22 = vpop.f32.mrf.mxu1 }
 0x28b   : >> { %v3716_v27 = vmov %v3497_v40  ;;  %v3502_v20 = vmax.f32 %v1741_v62, %v1939_v60   ;;  %v1940_v17 = vmax.f32 %v1835_v29, %v1908_v22  ;;  %v3724_v60 = vld [vmem:[#allocation25_spill] sm:$0xff]  ;;  %v1537_v5 = vmax.f32 %v1323_v37, %v1521_v33  ;;  %v3755_v37 = vld [vmem:[#allocation11_spill] sm:$0xff] (%p3555_p4) }
 0x28c   : >> { %v1837_v23 = vpop.f32.mrf.mxu0  ;;  %v1910_v49 = vpop.f32.mrf.mxu1  ;;  %v1735_v29 = vmax.f32 %v3725_v57, %v3724_v60  ;;  %v3727_v22 = vld [vmem:[#allocation21_spill] sm:$0xff] }
 0x28d   : >> { %v3507_v36 = vmax.f32 %v1742_v31, %v1940_v17   ;;  %v1941_v59 = vmax.f32 %v1837_v23, %v1910_v49  ;;  %v3728_v31 = vld [vmem:[#allocation22_spill] sm:$0xff]  ;;  %v3730_v17 = vld [vmem:[#allocation20_spill] sm:$0xff]  ;;  %v3731_v49 = vld [vmem:[#allocation23_spill] sm:$0xff] }
 0x28e   : >> { %v1839_v63 = vpop.f32.mrf.mxu0  ;;  %v1912_v32 = vpop.f32.mrf.mxu1  ;;  %v3729_v18 = vmax.f32 %v3727_v22, %v3728_v31  ;;  %v3746_v31 = vmov %v3502_v20 }
 0x28f   : >> { %v3717_v53 = vmov %v3507_v36  ;;  %v3512_v36 = vmax.f32 %v1743_v47, %v1941_v59   ;;  %v1942_v24 = vmax.f32 %v1839_v63, %v1912_v32  ;;  %v3733_v47 = vld [vmem:[#allocation26_spill] sm:$0xff] }
 0x290   : >> { %v1843_v46 = vpop.f32.mrf.mxu0  ;;  %v1916_v7 = vpop.f32.mrf.mxu1  ;;  %v1324_v58 = vmax.f32 %v3730_v17, %v3729_v18 }
 0x291   : >> { %v3718_v52 = vmov %v3512_v36  ;;  %v3517_v24 = vmax.f32 %v1744_v28, %v1942_v24   ;;  %v1943_v16 = vmax.f32 %v1843_v46, %v1916_v7  ;;  %v1751_v28 = vmax.f32 %v1537_v5, %v1735_v29 }
 0x292   : >> { %v1845_v40 = vpop.f32.mrf.mxu0  ;;  %v1918_v3 = vpop.f32.mrf.mxu1  ;;  %v3750_v29 = vmov %v3488_v11 }
 0x293   : >> { %v3719_v0 = vmov %v3517_v24  ;;  %v3522_v19 = vmax.f32 %v1745_v34, %v1943_v16   ;;  %v1944_v50 = vmax.f32 %v1845_v40, %v1918_v3  ;;  %v3747_v40 = vmov %v3716_v27 }
 0x294   : >> { %v1847_v9 = vpop.f32.mrf.mxu0  ;;  %v1920_v38 = vpop.f32.mrf.mxu1 }
 0x295   : >> { %v3720_v44 = vmov %v3522_v19  ;;  %v3527_v39 = vmax.f32 %v1746_v35, %v1944_v50   ;;  %v1945_v6 = vmax.f32 %v1847_v9, %v1920_v38  ;;  %v1734_v19 = vmax.f32 %v3474_v21, %v3476_v41  ;;  %v3751_v35 = vld [vmem:[#allocation7_spill] sm:$0xff] (%p3555_p4)  ;;  %v3752_v9 = vld [vmem:[#allocation9_spill] sm:$0xff] (%p3555_p4) }
 0x296   : >> { %v1849_v13 = vpop.f32.mrf.mxu0  ;;  %v1922_v61 = vpop.f32.mrf.mxu1  ;;  %v1967_v26 = vadd.f32 (%p3555_p4), %v3488_v11, %v3751_v35  ;;  %v1968_v50 = vadd.f32 (%p3555_p4), %v3491_v4, %v3751_v35  ;;  %v1969_v38 = vadd.f32 (%p3555_p4), %v3494_v42, %v3752_v9 }
 0x297   : >> { %v3721_v54 = vmov %v3527_v39  ;;  %v3534_v63 = vmax.f32 %v1747_v12, %v1945_v6   ;;  %v1946_v62 = vmax.f32 %v1849_v13, %v1922_v61  ;;  %v1522_v39 = vmax.f32 %v3446_v10, %v3448_v2  ;;  %v3732_v2 = vld [vmem:[#allocation27_spill] sm:$0xff]  ;;  %v3754_v61 = vld [vmem:[#allocation8_spill] sm:$0xff] (%p3555_p4) }
 0x298   : >> { %v1853_v30 = vpop.f32.mrf.mxu0  ;;  %v1926_v25 = vpop.f32.mrf.mxu1  ;;  %v1750_v10 = vmax.f32 %v3731_v49, %v1734_v19  ;;  %v1736_v8 = vmax.f32 %v3733_v47, %v3732_v2  ;;  %v3742_v19 = vmov %v3720_v44  ;;  %v3745_v47 = vmov %v3717_v53 }
 0x299   : >> { %v3722_v55 = vmov %v3534_v63  ;;  %v3545_v7 = vmax.f32 %v1748_v15, %v1946_v62   ;;  %v1947_v41 = vmax.f32 %v1853_v30, %v1926_v25  ;;  %v1538_v32 = vmax.f32 %v1324_v58, %v1522_v39  ;;  %v3756_v25 = vld [vmem:[#allocation10_spill] sm:$0xff] (%p3555_p4) }
 0x29a   : >> { %v1855_v45 = vpop.f32.mrf.mxu0  ;;  %v1928_v23 = vpop.f32.mrf.mxu1  ;;  %v3741_v39 = vmov %v3721_v54  ;;  %v3749_v15 = vmov %v3491_v4  ;;  %v1970_v12 = vadd.f32 (%p3555_p4), %v3716_v27, %v3752_v9  ;;  %v1971_v6 = vadd.f32 (%p3555_p4), %v3502_v20, %v3753_v56 }
 0x29b   : >> { %v3726_v21 = vmov %v3545_v7  ;;  %v1963_v1 = vmax.f32 %v1749_v48, %v1947_v41   ;;  %v1948_v36 = vmax.f32 %v1855_v45, %v1928_v23  ;;  %v1752_v34 = vmax.f32 %v1538_v32, %v1736_v8  ;;  %v3757_v41 = vld [vmem:[#allocation13_spill] sm:$0xff] (%p3555_p4) }
 0x29c   : >> { %v1857_v59 = vpop.f32.mrf.mxu0  ;;  %v1930_v63 = vpop.f32.mrf.mxu1  ;;  %v1972_v13 = vadd.f32 (%p3555_p4), %v3717_v53, %v3753_v56  ;;  %v1973_v40 = vadd.f32 (%p3555_p4), %v3718_v52, %v3754_v61  ;;  %v1974_v11 = vadd.f32 (%p3555_p4), %v3719_v0, %v3754_v61  ;;  %v1984_v4 = vmax.f32 (%p3555_p4), %v1968_v50, 0.0 }
 0x29d   : >> { %v1964_v51 = vmax.f32 %v1750_v10, %v1948_v36   ;;  %v1949_v24 = vmax.f32 %v1857_v59, %v1930_v63  ;;  %v3738_v10 = vmov %v1963_v1  ;;  %v3740_v63 = vmov %v3722_v55 }
 0x29e   : >> { %v1859_v46 = vpop.f32.mrf.mxu0  ;;  %v1932_v7 = vpop.f32.mrf.mxu1  ;;  %v3744_v36 = vmov %v3718_v52  ;;  %v1986_v15 = vmax.f32 (%p3555_p4), %v1970_v12, 0.0  ;;  %v1987_v19 = vmax.f32 (%p3555_p4), %v1971_v6, 0.0  ;;  %v1988_v27 = vmax.f32 (%p3555_p4), %v1972_v13, 0.0 }
 0x29f   : >> { %v1965_v14 = vmax.f32 %v1751_v28, %v1949_v24   ;;  %v1950_v16 = vmax.f32 %v1859_v46, %v1932_v7  ;;  %v3737_v33 = vmov %v1964_v51  ;;  %v3739_v7 = vmov %v3726_v21  ;;  %1093 = sbr.rel (!%p3555_p4) target bundleno = 344 (0x158), region = 76 }
 0x2a0   : >> { %v3743_v24 = vmov %v3719_v0  ;;  %v3748_v46 = vmov %v3494_v42  ;;  %v1983_v33 = vmax.f32 (%p3555_p4), %v1967_v26, 0.0  ;;  %v1985_v42 = vmax.f32 (%p3555_p4), %v1969_v38, 0.0 }
 0x2a1   : >> { %v1966_v3 = vmax.f32 %v1752_v34, %v1950_v16   ;;  %v3736_v45 = vmov %v1965_v14  ;;  %v1989_v62 = vmax.f32 (%p3555_p4), %v1973_v40, 0.0  ;;  %v1990_v20 = vmax.f32 (%p3555_p4), %v1974_v11, 0.0 }
 0x2a2   : > { %v2352_v43 = vpack.c.bf16 (%p3555_p4), %v1984_v4, %v1983_v33  ;;  %v2353_v53 = vpack.c.bf16 (%p3555_p4), %v1986_v15, %v1985_v42  ;;  %v1975_v52 = vadd.f32 (%p3555_p4), %v3720_v44, %v3755_v37  ;;  %v1976_v0 = vadd.f32 (%p3555_p4), %v3721_v54, %v3755_v37 }
 0x2a3   : >> { %v3735_v22 = vmov %v1966_v3  ;;  %v2354_v39 = vpack.c.bf16 (%p3555_p4), %v1988_v27, %v1987_v19  ;;  %v2355_v30 = vpack.c.bf16 (%p3555_p4), %v1990_v20, %v1989_v62  ;;  %v1977_v48 = vadd.f32 (%p3555_p4), %v3722_v55, %v3756_v25  ;;  %v3758_v55 = vld [vmem:[#allocation12_spill] sm:$0xff] (%p3555_p4) }
 0x2a4   : > { %v1978_v60 = vadd.f32 %v3726_v21, %v3756_v25  ;;  %2047 = vst [vmem:[%s2746_s21] sm:$0xff] %v2352_v43  ;;  %2048 = vst [vmem:[%s2746_s21 + $0x8] sm:$0xff] %v2353_v53  ;;  %v1991_v57 = vmax.f32 %v1975_v52, 0.0  ;;  %v1992_v29 = vmax.f32 %v1976_v0, 0.0  ;;  %v1979_v22 = vadd.f32 %v1963_v1, %v3757_v41 }
 0x2a5   : > { %v1980_v44 = vadd.f32 %v1964_v51, %v3757_v41  ;;  %2049 = vst [vmem:[%s2746_s21 + $0x10] sm:$0xff] %v2354_v39  ;;  %2050 = vst [vmem:[%s2746_s21 + $0x18] sm:$0xff] %v2355_v30  ;;  %v1993_v54 = vmax.f32 %v1977_v48, 0.0  ;;  %v1981_v18 = vadd.f32 %v1965_v14, %v3758_v55  ;;  %v1982_v21 = vadd.f32 %v1966_v3, %v3758_v55 }
 0x2a6   : > { %v1994_v31 = vmax.f32 %v1978_v60, 0.0  ;;  %v2356_v17 = vpack.c.bf16 %v1992_v29, %v1991_v57  ;;  %v1995_v58 = vmax.f32 %v1979_v22, 0.0 }
 0x2a7   : > { %v1996_v5 = vmax.f32 %v1980_v44, 0.0  ;;  %v1997_v23 = vmax.f32 %v1981_v18, 0.0  ;;  %v1998_v49 = vmax.f32 %v1982_v21, 0.0 }
 0x2a8   : > { %v2357_v45 = vpack.c.bf16 %v1994_v31, %v1993_v54  ;;  %2051 = vst [vmem:[%s2746_s21 + $0x20] sm:$0xff] %v2356_v17 }
 0x2a9   : > { %v2358_v10 = vpack.c.bf16 %v1996_v5, %v1995_v58  ;;  %v2359_v2 = vpack.c.bf16 %v1998_v49, %v1997_v23 }
 0x2aa   : > { %2052 = vst [vmem:[%s2746_s21 + $0x28] sm:$0xff] %v2357_v45 }
 0x2ab   : > { %2053 = vst [vmem:[%s2746_s21 + $0x30] sm:$0xff] %v2358_v10  ;;  %2054 = vst [vmem:[%s2746_s21 + $0x38] sm:$0xff] %v2359_v2 }
 0x2ac PF: > { %s13_s12 = sadd.s32 1, %s2634_s12  }
 0x2ad   : > { %p10_p5 = scmp.ge.s32.totalorder %s13_s12, 4  }
 0x2af   :  { %12 = sbr.rel (!%p10_p5) target bundleno = 1 (0x1), region = 87 }

</bundles_post_ra>
